<compile_context>
chip_gen: v5e
topology: v5e:2x2
jax: 0.10.0
libtpu: 0.0.40
codegen_flags: <defaults>
</compile_context>

<pallas_src>
import jax
import jax.numpy as jnp
from jax.experimental import pallas as pl
from jax.experimental.pallas import tpu as pltpu

L = 1000          # resnet34 fc output dim (self.L)
D = 128           # attention hidden dim   (self.D)
K = 1             # attention heads per branch (self.K)
L_PAD = 1024      # lane-aligned feature dim
FUSED_COLS = 2 * D + 128   # [w1a | w1b | wc1, wc2, zero-pad] -> 384 (3x128 lanes)


def _mil_attention_kernel(h_ref, wbig_ref, bbig_ref, w2_ref, b2_ref, bc_ref,
                          yprob_ref, a_ref):
    """Fused two-branch MIL attention + classifiers for one tile of bags.

    h_ref    : (TILE_B, N, L_PAD) bf16 instance features
    wbig_ref : (L_PAD, 384) bf16  fused [attn1 W1 | attn2 W1 | wc1 | wc2 | 0]
    bbig_ref : (1, 384) f32       fused [b1a | b1b | 0]
    w2_ref   : (256, 2) f32       block-diag [w2a ; 0 | 0 ; w2b]
    b2_ref   : (1, 2) f32         [b2a, b2b]
    bc_ref   : (1, 2) f32         [bc1, bc2]
    yprob_ref: (TILE_B, 1, 2) f32 classifier outputs
    a_ref    : (TILE_B, N, 2) f32 per-bag softmaxed attention maps
    """
    TB, N, LP = h_ref.shape
    H2 = h_ref[...].reshape(TB * N, LP)                       # bf16 (TB*N, 1024)

    # One fused MXU pass over H: both tanh branches + per-instance classifier
    # scores ride along as extra columns. f32 accumulation.
    Z = jnp.dot(H2, wbig_ref[...], preferred_element_type=jnp.float32)
    Z = Z + bbig_ref[...]                                     # (TB*N, 384)

    T = jnp.tanh(Z[:, : 2 * D])                               # (TB*N, 256)  (EUP)
    S = Z[:, 2 * D: 2 * D + 2]                                # (TB*N, 2) = H @ [wc1, wc2]

    # Attention logits for both heads via one small block-diagonal matmul.
    logits = jnp.dot(T, w2_ref[...], preferred_element_type=jnp.float32)
    logits = logits + b2_ref[...]                             # (TB*N, 2)

    logits3 = logits.reshape(TB, N, 2)
    s3 = S.reshape(TB, N, 2)

    # Per-bag softmax over the N instances (torch: softmax(dim=2)).
    m = jnp.max(logits3, axis=1, keepdims=True)
    e = jnp.exp(logits3 - m)
    a3 = e / jnp.sum(e, axis=1, keepdims=True)                # (TB, N, 2)

    # Y_prob[b, h] = sum_n A[b,n,h] * (H[b,n] @ wc_h) + bc_h
    # Algebraically identical to classifier(A @ H) since softmax(A) sums to 1.
    yprob_ref[...] = jnp.sum(a3 * s3, axis=1, keepdims=True) + bc_ref[...]
    a_ref[...] = a3                                           # natural layout, no transpose


def _choose_tile_b(B, N):
    """~2 MiB of bf16 features per pipeline buffer (double-buffered by Pallas)."""
    budget_rows = 1024                       # rows of padded L=1024 bf16
    tb = max(1, budget_rows // max(N, 1))
    return min(tb, B)


def attention_slide_multibatch(x, params):
    """Forward pass mirroring AttentionSlide_MultiBatch.forward.

    Returns (Y_prob (B,2), Y_hat (B,), A (B,2,N)).
    """
    B, N = x.shape[0], x.shape[1]

    # TODO(synk): torchvision resnet34(pretrained=True) backbone has no clean
    # Pallas equivalent; replaced by a deterministic stand-in
    # (global average pool over spatial dims + Linear(3 -> L)).
    pooled = jnp.mean(x, axis=(3, 4))                               # (B, N, 3)
    h_feat = pooled @ params["w_proj"] + params["b_proj"]           # (B, N, L) f32

    # ---- pack / fuse parameters (constant-folds under jit) -----------------
    wbig = jnp.zeros((L_PAD, FUSED_COLS), jnp.float32)
    wbig = wbig.at[:L, 0:D].set(params["w1a"])
    wbig = wbig.at[:L, D:2 * D].set(params["w1b"])
    wbig = wbig.at[:L, 2 * D].set(params["wc1"][0])
    wbig = wbig.at[:L, 2 * D + 1].set(params["wc2"][0])
    wbig = wbig.astype(jnp.bfloat16)

    bbig = jnp.zeros((1, FUSED_COLS), jnp.float32)
    bbig = bbig.at[:, 0:D].set(params["b1a"])
    bbig = bbig.at[:, D:2 * D].set(params["b1b"])

    w2blk = jnp.zeros((2 * D, 2), jnp.float32)
    w2blk = w2blk.at[0:D, 0].set(params["w2a"][0])
    w2blk = w2blk.at[D:2 * D, 1].set(params["w2b"][0])
    b2cat = jnp.concatenate([params["b2a"], params["b2b"]], axis=1)   # (1, 2)
    bccat = jnp.concatenate([params["bc1"], params["bc2"]], axis=1)   # (1, 2)

    # ---- lane-pad L -> 1024 and stream features as bf16 --------------------
    h_pad = jnp.pad(h_feat, ((0, 0), (0, 0), (0, L_PAD - L))).astype(jnp.bfloat16)

    # ---- tile over bags; pad B up to a tile multiple (zero bags are benign) -
    tile_b = _choose_tile_b(B, N)
    b_pad = pl.cdiv(B, tile_b) * tile_b
    if b_pad != B:
        h_pad = jnp.pad(h_pad, ((0, b_pad - B), (0, 0), (0, 0)))
    grid = (b_pad // tile_b,)

    rows = b_pad * N
    cost = pl.CostEstimate(
        flops=2 * rows * L_PAD * FUSED_COLS + 2 * rows * (2 * D) * 2,
        transcendentals=rows * (2 * D + 2),
        bytes_accessed=(rows * L_PAD * 2 + L_PAD * FUSED_COLS * 2
                        + b_pad * 2 * 4 + b_pad * N * 2 * 4),
    )

    yprob, attn = pl.pallas_call(
        _mil_attention_kernel,
        out_shape=(jax.ShapeDtypeStruct((b_pad, 1, 2), jnp.float32),
                   jax.ShapeDtypeStruct((b_pad, N, 2), jnp.float32)),
        grid_spec=pltpu.PrefetchScalarGridSpec(
            num_scalar_prefetch=0,
            grid=grid,
            in_specs=[
                pl.BlockSpec((tile_b, N, L_PAD), lambda i: (i, 0, 0)),
                pl.BlockSpec((L_PAD, FUSED_COLS), lambda i: (0, 0)),
                pl.BlockSpec((1, FUSED_COLS), lambda i: (0, 0)),
                pl.BlockSpec((2 * D, 2), lambda i: (0, 0)),
                pl.BlockSpec((1, 2), lambda i: (0, 0)),
                pl.BlockSpec((1, 2), lambda i: (0, 0)),
            ],
            out_specs=(pl.BlockSpec((tile_b, 1, 2), lambda i: (i, 0, 0)),
                       pl.BlockSpec((tile_b, N, 2), lambda i: (i, 0, 0))),
        ),
        compiler_params=pltpu.CompilerParams(
            dimension_semantics=("parallel",),
            vmem_limit_bytes=32 * 1024 * 1024,
        ),
        cost_estimate=cost,
    )(h_pad, wbig, bbig, w2blk, b2cat, bccat)

    yprob = yprob[:B, 0, :]                         # (B, 2)
    attn = jnp.swapaxes(attn[:B], 1, 2)             # (B, 2, N) — layout plumbing
    y_hat = jnp.argmax(yprob, axis=1)               # torch.max(Y_prob, 1) indices
    return yprob, y_hat, attn


def init_params(key):
    """Deterministic synthetic parameters matching the module's shapes."""
    ks = jax.random.split(key, 14)
    s = 0.05

    def nrm(k, shape):
        return jax.random.normal(k, shape, jnp.float32) * s

    return dict(
        w_proj=nrm(ks[0], (3, L)), b_proj=nrm(ks[1], (L,)),     # backbone stub
        w1a=nrm(ks[2], (L, D)),  b1a=nrm(ks[3], (1, D)),        # attention1[0]
        w2a=nrm(ks[4], (1, D)),  b2a=nrm(ks[5], (1, 1)),        # attention1[2]
        wc1=nrm(ks[6], (1, L)),  bc1=nrm(ks[7], (1, 1)),        # classifier1
        w1b=nrm(ks[8], (L, D)),  b1b=nrm(ks[9], (1, D)),        # attention2[0]
        w2b=nrm(ks[10], (1, D)), b2b=nrm(ks[11], (1, 1)),       # attention2[2]
        wc2=nrm(ks[12], (1, L)), bc2=nrm(ks[13], (1, 1)),       # classifier2
    )


def _reference(x, p):
    """Pure-JAX f32 reference mirroring the torch forward (same backbone stub)."""
    B, N = x.shape[0], x.shape[1]
    pooled = jnp.mean(x, axis=(3, 4))
    hf = pooled @ p["w_proj"] + p["b_proj"]            # (B, N, L)
    h2 = hf.reshape(B * N, L)

    def head(w1, b1, w2, b2, wc, bc):
        t = jnp.tanh(h2 @ w1 + b1)                     # (B*N, D)
        logit = t @ w2.T + b2                          # (B*N, 1)
        a = jax.nn.softmax(logit.reshape(B, N), axis=-1)
        mv = jnp.einsum("bn,bnl->bl", a, hf)
        pr = mv @ wc.T + bc                            # (B, 1)
        return a, pr[:, 0]

    a1, p1 = head(p["w1a"], p["b1a"], p["w2a"], p["b2a"], p["wc1"], p["bc1"])
    a2, p2 = head(p["w1b"], p["b1b"], p["w2b"], p["b2b"], p["wc2"], p["bc2"])
    yprob = jnp.stack([p1, p2], axis=1)
    yhat = jnp.argmax(yprob, axis=1)
    attn = jnp.stack([a1, a2], axis=1)
    return yprob, yhat, attn


if __name__ == "__main__":
    key = jax.random.PRNGKey(0)
    kx, kp = jax.random.split(key)

    B, N, Himg, Wimg = 2, 8, 16, 16        # 2 bags, 8 instances each, 3x16x16 images
    x = jax.random.normal(kx, (B, N, 3, Himg, Wimg), jnp.float32)
    params = init_params(kp)

    yprob, yhat, attn = jax.block_until_ready(
        jax.jit(attention_slide_multibatch)(x, params)
    )

    # sanity check against the pure-JAX f32 reference (kernel streams bf16,
    # accumulates in f32 -> loosened tolerances)
    ry, rh, ra = _reference(x, params)
    assert yprob.shape == (B, 2) and attn.shape == (B, 2, N) and yhat.shape == (B,)
    assert jnp.allclose(yprob, ry, atol=5e-3, rtol=5e-2), "Y_prob mismatch"
    assert jnp.allclose(attn, ra, atol=5e-3, rtol=5e-2), "A mismatch"
    # argmax can legitimately flip only when the two heads are numerically tied
    margin = jnp.abs(ry[:, 0] - ry[:, 1])
    assert bool(jnp.all((yhat == rh) | (margin < 1e-2))), "Y_hat mismatch"

    print("KERNEL_OK")
</pallas_src>

<mosaic_0001>
module attributes {stable_mosaic.version = 11 : i64} {
  func.func @_mil_attention_kernel(%arg0: i32, %arg1: memref<2x8x1024xbf16, #tpu.memory_space<vmem>>, %arg2: memref<1024x384xbf16, #tpu.memory_space<vmem>>, %arg3: memref<1x384xf32, #tpu.memory_space<vmem>>, %arg4: memref<256x2xf32, #tpu.memory_space<vmem>>, %arg5: memref<1x2xf32, #tpu.memory_space<vmem>>, %arg6: memref<1x2xf32, #tpu.memory_space<vmem>>, %arg7: memref<2x1x2xf32, #tpu.memory_space<vmem>>, %arg8: memref<2x8x2xf32, #tpu.memory_space<vmem>>) attributes {dimension_semantics = [#tpu.dimension_semantics<parallel>], iteration_bounds = array<i64: 1>, scalar_prefetch = 0 : i64, scratch_operands = 0 : i64, tpu.core_type = #tpu.core_type<tc>, window_params = [{transform_indices = @transform_0, window_bounds = array<i64: 2, 8, 1024>}, {pipeline_mode = #tpu.pipeline_mode<synchronous>, transform_indices = @transform_1, window_bounds = array<i64: 1024, 384>}, {pipeline_mode = #tpu.pipeline_mode<synchronous>, transform_indices = @transform_2, window_bounds = array<i64: 1, 384>}, {pipeline_mode = #tpu.pipeline_mode<synchronous>, transform_indices = @transform_3, window_bounds = array<i64: 256, 2>}, {pipeline_mode = #tpu.pipeline_mode<synchronous>, transform_indices = @transform_4, window_bounds = array<i64: 1, 2>}, {pipeline_mode = #tpu.pipeline_mode<synchronous>, transform_indices = @transform_5, window_bounds = array<i64: 1, 2>}, {transform_indices = @transform_6, window_bounds = array<i64: 2, 1, 2>}, {transform_indices = @transform_7, window_bounds = array<i64: 2, 8, 2>}]} {
    %c0 = arith.constant 0 : index
    %c0_0 = arith.constant 0 : index
    %c0_1 = arith.constant 0 : index
    %0 = vector.load %arg1[%c0, %c0_0, %c0_1] : memref<2x8x1024xbf16, #tpu.memory_space<vmem>>, vector<2x8x1024xbf16>
    %1 = vector.shape_cast %0 : vector<2x8x1024xbf16> to vector<16x1024xbf16>
    %c0_2 = arith.constant 0 : index
    %c0_3 = arith.constant 0 : index
    %2 = vector.load %arg2[%c0_2, %c0_3] : memref<1024x384xbf16, #tpu.memory_space<vmem>>, vector<1024x384xbf16>
    %cst = arith.constant dense<0.000000e+00> : vector<16x384xf32>
    %3 = tpu.matmul %1, %2, %cst {dimension_numbers = #tpu.dot_dimension_numbers<[1], [0], [0], [1], [0, 0, 1, 1], [], []>} : vector<16x1024xbf16>, vector<1024x384xbf16>, vector<16x384xf32> -> vector<16x384xf32>
    %c0_4 = arith.constant 0 : index
    %c0_5 = arith.constant 0 : index
    %4 = vector.load %arg3[%c0_4, %c0_5] : memref<1x384xf32, #tpu.memory_space<vmem>>, vector<1x384xf32>
    %5 = vector.broadcast %4 : vector<1x384xf32> to vector<16x384xf32>
    %6 = arith.addf %3, %5 : vector<16x384xf32>
    %7 = vector.extract_strided_slice %6 {offsets = [0, 0], sizes = [16, 256], strides = [1, 1]} : vector<16x384xf32> to vector<16x256xf32>
    %8 = math.tanh %7 : vector<16x256xf32>
    %9 = vector.extract_strided_slice %6 {offsets = [0, 256], sizes = [16, 2], strides = [1, 1]} : vector<16x384xf32> to vector<16x2xf32>
    %c0_6 = arith.constant 0 : index
    %c0_7 = arith.constant 0 : index
    %10 = vector.load %arg4[%c0_6, %c0_7] : memref<256x2xf32, #tpu.memory_space<vmem>>, vector<256x2xf32>
    %cst_8 = arith.constant dense<0.000000e+00> : vector<16x2xf32>
    %11 = tpu.matmul %8, %10, %cst_8 {dimension_numbers = #tpu.dot_dimension_numbers<[1], [0], [0], [1], [0, 0, 1, 1], [], []>} : vector<16x256xf32>, vector<256x2xf32>, vector<16x2xf32> -> vector<16x2xf32>
    %c0_9 = arith.constant 0 : index
    %c0_10 = arith.constant 0 : index
    %12 = vector.load %arg5[%c0_9, %c0_10] : memref<1x2xf32, #tpu.memory_space<vmem>>, vector<1x2xf32>
    %13 = vector.broadcast %12 : vector<1x2xf32> to vector<16x2xf32>
    %14 = arith.addf %11, %13 : vector<16x2xf32>
    %15 = vector.shape_cast %14 : vector<16x2xf32> to vector<2x8x2xf32>
    %16 = vector.shape_cast %9 : vector<16x2xf32> to vector<2x8x2xf32>
    %cst_11 = arith.constant dense<0xFF800000> : vector<2x2xf32>
    %17 = vector.multi_reduction <maximumf>, %15, %cst_11 [1] : vector<2x8x2xf32> to vector<2x2xf32>
    %18 = vector.shape_cast %17 : vector<2x2xf32> to vector<2x1x2xf32>
    %19 = vector.broadcast %18 : vector<2x1x2xf32> to vector<2x8x2xf32>
    %20 = arith.subf %15, %19 : vector<2x8x2xf32>
    %21 = math.exp %20 : vector<2x8x2xf32>
    %cst_12 = arith.constant dense<0.000000e+00> : vector<2x2xf32>
    %22 = vector.multi_reduction <add>, %21, %cst_12 [1] : vector<2x8x2xf32> to vector<2x2xf32>
    %23 = vector.shape_cast %22 : vector<2x2xf32> to vector<2x1x2xf32>
    %24 = vector.broadcast %23 : vector<2x1x2xf32> to vector<2x8x2xf32>
    %25 = arith.divf %21, %24 : vector<2x8x2xf32>
    %26 = arith.mulf %25, %16 : vector<2x8x2xf32>
    %cst_13 = arith.constant dense<0.000000e+00> : vector<2x2xf32>
    %27 = vector.multi_reduction <add>, %26, %cst_13 [1] : vector<2x8x2xf32> to vector<2x2xf32>
    %28 = vector.shape_cast %27 : vector<2x2xf32> to vector<2x1x2xf32>
    %c0_14 = arith.constant 0 : index
    %c0_15 = arith.constant 0 : index
    %29 = vector.load %arg6[%c0_14, %c0_15] : memref<1x2xf32, #tpu.memory_space<vmem>>, vector<1x2xf32>
    %30 = vector.shape_cast %29 : vector<1x2xf32> to vector<1x1x2xf32>
    %31 = vector.broadcast %30 : vector<1x1x2xf32> to vector<2x1x2xf32>
    %32 = arith.addf %28, %31 : vector<2x1x2xf32>
    %c0_16 = arith.constant 0 : index
    %c0_17 = arith.constant 0 : index
    %c0_18 = arith.constant 0 : index
    %33 = vector.load %arg7[%c0_16, %c0_17, %c0_18] : memref<2x1x2xf32, #tpu.memory_space<vmem>>, vector<2x1x2xf32>
    tpu.vector_store %arg7[%c0_16, %c0_17, %c0_18], %32 {strides = array<i32>} : memref<2x1x2xf32, #tpu.memory_space<vmem>>, vector<2x1x2xf32>,
    %c0_19 = arith.constant 0 : index
    %c0_20 = arith.constant 0 : index
    %c0_21 = arith.constant 0 : index
    %34 = vector.load %arg8[%c0_19, %c0_20, %c0_21] : memref<2x8x2xf32, #tpu.memory_space<vmem>>, vector<2x8x2xf32>
    tpu.vector_store %arg8[%c0_19, %c0_20, %c0_21], %25 {strides = array<i32>} : memref<2x8x2xf32, #tpu.memory_space<vmem>>, vector<2x8x2xf32>,
    return
  }
  func.func @transform_0(%arg0: i32) -> (i32, i32, i32) {
    %c0_i32 = arith.constant 0 : i32
    %c0_i32_0 = arith.constant 0 : i32
    %c0_i32_1 = arith.constant 0 : i32
    return %arg0, %c0_i32, %c0_i32_0 : i32, i32, i32
  }
  func.func @transform_1(%arg0: i32) -> (i32, i32) {
    %c0_i32 = arith.constant 0 : i32
    %c0_i32_0 = arith.constant 0 : i32
    %c0_i32_1 = arith.constant 0 : i32
    return %c0_i32, %c0_i32_0 : i32, i32
  }
  func.func @transform_2(%arg0: i32) -> (i32, i32) {
    %c0_i32 = arith.constant 0 : i32
    %c0_i32_0 = arith.constant 0 : i32
    %c0_i32_1 = arith.constant 0 : i32
    return %c0_i32, %c0_i32_0 : i32, i32
  }
  func.func @transform_3(%arg0: i32) -> (i32, i32) {
    %c0_i32 = arith.constant 0 : i32
    %c0_i32_0 = arith.constant 0 : i32
    %c0_i32_1 = arith.constant 0 : i32
    return %c0_i32, %c0_i32_0 : i32, i32
  }
  func.func @transform_4(%arg0: i32) -> (i32, i32) {
    %c0_i32 = arith.constant 0 : i32
    %c0_i32_0 = arith.constant 0 : i32
    %c0_i32_1 = arith.constant 0 : i32
    return %c0_i32, %c0_i32_0 : i32, i32
  }
  func.func @transform_5(%arg0: i32) -> (i32, i32) {
    %c0_i32 = arith.constant 0 : i32
    %c0_i32_0 = arith.constant 0 : i32
    %c0_i32_1 = arith.constant 0 : i32
    return %c0_i32, %c0_i32_0 : i32, i32
  }
  func.func @transform_6(%arg0: i32) -> (i32, i32, i32) {
    %c0_i32 = arith.constant 0 : i32
    %c0_i32_0 = arith.constant 0 : i32
    %c0_i32_1 = arith.constant 0 : i32
    return %arg0, %c0_i32, %c0_i32_0 : i32, i32, i32
  }
  func.func @transform_7(%arg0: i32) -> (i32, i32, i32) {
    %c0_i32 = arith.constant 0 : i32
    %c0_i32_0 = arith.constant 0 : i32
    %c0_i32_1 = arith.constant 0 : i32
    return %arg0, %c0_i32, %c0_i32_0 : i32, i32, i32
  }
}

</mosaic_0001>

<bundles_post_ra>
// kernel: attention_slide_multibatch.1
= control target key start
LH: loop header
LB: loop body
LE: loop exit
PB: predicated region body
PF: predicated region fallthrough
CT: control target
= control target key end

     0   :  { %vm1783_vm0 = vcmask 15360   ;;  %vm1867_vm9 = vcmask 8192   ;;  %s4348_s1 = inlined_call_operand.vmem [shape: bf16[1024,384], index: 1, kind: input, shape index: {}]   ;;  %s4349_s0 = inlined_call_operand.vmem [shape: bf16[2,8,1024], index: 0, kind: input, shape index: {}]   ;;  %s4350_s2 = inlined_call_operand.vmem [shape: f32[1,384], index: 2, kind: input, shape index: {}]   ;;  %s4351_s3 = inlined_call_operand.vmem [shape: f32[256,2], index: 3, kind: input, shape index: {}]   ;;  %s4352_s4 = inlined_call_operand.vmem [shape: f32[1,2], index: 4, kind: input, shape index: {}]   ;;  %s4353_s7 = inlined_call_operand.vmem [shape: f32[2,8,2], index: 7, kind: output, shape index: {1}]   ;;  %s4354_s5 = inlined_call_operand.vmem [shape: f32[1,2], index: 5, kind: input, shape index: {}]   ;;  %s4355_s6 = inlined_call_operand.vmem [shape: f32[2,1,2], index: 6, kind: output, shape index: {0}]  }
   0x1   :  { %v1998_v0 = vld [vmem:[%s4348_s1 + $0xa8] sm:$0xf]  ;;  %v2710_v1 = vld [vmem:[%s4348_s1 + $0xb0] sm:$0xf0]  ;;  %v1986_v11 = vld [vmem:[%s4348_s1 + $0x90] sm:$0xf] }
   0x2   :  { %v2094_v2 = vld [vmem:[%s4348_s1 + $0x168] sm:$0xf]  ;;  %v1999_v3 = vor.u32 %v2710_v1, %v1998_v0  ;;  %v2734_v4 = vld [vmem:[%s4348_s1 + $0x170] sm:$0xf0]  ;;  %v2707_v13 = vld [vmem:[%s4348_s1 + $0x98] sm:$0xf0] }
   0x3   :  { %v2190_v5 = vld [vmem:[%s4348_s1 + $0x228] sm:$0xf]  ;;  %v2758_v6 = vld [vmem:[%s4348_s1 + $0x230] sm:$0xf0]  ;;  %v2095_v7 = vor.u32 %v2734_v4, %v2094_v2  ;;  %v2082_v14 = vld [vmem:[%s4348_s1 + $0x150] sm:$0xf]  ;;  %v1987_v16 = vor.u32 %v2707_v13, %v1986_v11 }
   0x4   :  { %v2191_v8 = vor.u32 %v2758_v6, %v2190_v5  ;;  %v2286_v9 = vld [vmem:[%s4348_s1 + $0x2e8] sm:$0xf]  ;;  %v2782_v10 = vld [vmem:[%s4348_s1 + $0x2f0] sm:$0xf0]  ;;  %1361 = vmatpush.bf16.msra.mxu0 %v1999_v3  ;;  %v2731_v15 = vld [vmem:[%s4348_s1 + $0x158] sm:$0xf0] }
   0x5   :  { %v2287_v12 = vor.u32 %v2782_v10, %v2286_v9  ;;  %1375 = vmatpush.bf16.msra.mxu1 %v2095_v7  ;;  %v2083_v17 = vor.u32 %v2731_v15, %v2082_v14  ;;  %v2178_v18 = vld [vmem:[%s4348_s1 + $0x210] sm:$0xf]  ;;  %v2755_v19 = vld [vmem:[%s4348_s1 + $0x218] sm:$0xf0]  ;;  %v1974_v23 = vld [vmem:[%s4348_s1 + $0x78] sm:$0xf] }
   0x6   :  { %1389 = vmatpush.bf16.msra.mxu2 %v2191_v8  ;;  %v2274_v20 = vld [vmem:[%s4348_s1 + $0x2d0] sm:$0xf]  ;;  %v2179_v21 = vor.u32 %v2755_v19, %v2178_v18  ;;  %v2779_v22 = vld [vmem:[%s4348_s1 + $0x2d8] sm:$0xf0]  ;;  %v2704_v24 = vld [vmem:[%s4348_s1 + $0x80] sm:$0xf0] }
   0x7   :  { %1403 = vmatpush.bf16.msra.mxu3 %v2287_v12  ;;  %v2275_v25 = vor.u32 %v2779_v22, %v2274_v20  ;;  %v2070_v26 = vld [vmem:[%s4348_s1 + $0x138] sm:$0xf]  ;;  %v2728_v27 = vld [vmem:[%s4348_s1 + $0x140] sm:$0xf0]  ;;  %v1975_v29 = vor.u32 %v2704_v24, %v1974_v23  ;;  %v1962_v35 = vld [vmem:[%s4348_s1 + $0x60] sm:$0xf] }
   0x8   :  { %v2166_v28 = vld [vmem:[%s4348_s1 + $0x1f8] sm:$0xf]  ;;  %1362 = vmatpush.bf16.msra.mxu0 %v1987_v16  ;;  %v2752_v30 = vld [vmem:[%s4348_s1 + $0x200] sm:$0xf0]  ;;  %v2071_v33 = vor.u32 %v2728_v27, %v2070_v26  ;;  %v2701_v36 = vld [vmem:[%s4348_s1 + $0x68] sm:$0xf0] }
   0x9   :  { %v2262_v31 = vld [vmem:[%s4348_s1 + $0x2b8] sm:$0xf]  ;;  %v2776_v32 = vld [vmem:[%s4348_s1 + $0x2c0] sm:$0xf0]  ;;  %1376 = vmatpush.bf16.msra.mxu1 %v2083_v17  ;;  %v2167_v34 = vor.u32 %v2752_v30, %v2166_v28  ;;  %v2058_v37 = vld [vmem:[%s4348_s1 + $0x120] sm:$0xf]  ;;  %v1963_v44 = vor.u32 %v2701_v36, %v1962_v35 }
   0xa   :  { %1390 = vmatpush.bf16.msra.mxu2 %v2179_v21  ;;  %v2263_v38 = vor.u32 %v2776_v32, %v2262_v31  ;;  %v2725_v39 = vld [vmem:[%s4348_s1 + $0x128] sm:$0xf0]  ;;  %v2154_v40 = vld [vmem:[%s4348_s1 + $0x1e0] sm:$0xf]  ;;  %v1950_v47 = vld [vmem:[%s4348_s1 + $0x48] sm:$0xf] }
   0xb   :  { %1404 = vmatpush.bf16.msra.mxu3 %v2275_v25  ;;  %v2749_v41 = vld [vmem:[%s4348_s1 + $0x1e8] sm:$0xf0]  ;;  %v2250_v42 = vld [vmem:[%s4348_s1 + $0x2a0] sm:$0xf]  ;;  %v2059_v45 = vor.u32 %v2725_v39, %v2058_v37  ;;  %v2698_v48 = vld [vmem:[%s4348_s1 + $0x50] sm:$0xf0] }
   0xc   :  { %v2773_v43 = vld [vmem:[%s4348_s1 + $0x2a8] sm:$0xf0]  ;;  %1363 = vmatpush.bf16.msra.mxu0 %v1975_v29  ;;  %v2155_v46 = vor.u32 %v2749_v41, %v2154_v40  ;;  %v2046_v49 = vld [vmem:[%s4348_s1 + $0x108] sm:$0xf]  ;;  %v2722_v51 = vld [vmem:[%s4348_s1 + $0x110] sm:$0xf0]  ;;  %v1951_v56 = vor.u32 %v2698_v48, %v1950_v47 }
   0xd   :  { %1377 = vmatpush.bf16.msra.mxu1 %v2071_v33  ;;  %v2251_v50 = vor.u32 %v2773_v43, %v2250_v42  ;;  %v2142_v52 = vld [vmem:[%s4348_s1 + $0x1c8] sm:$0xf]  ;;  %v2746_v53 = vld [vmem:[%s4348_s1 + $0x1d0] sm:$0xf0]  ;;  %v2047_v57 = vor.u32 %v2722_v51, %v2046_v49  ;;  %v1938_v59 = vld [vmem:[%s4348_s1 + $0x30] sm:$0xf] }
   0xe   :  { %1391 = vmatpush.bf16.msra.mxu2 %v2167_v34  ;;  %v2238_v54 = vld [vmem:[%s4348_s1 + $0x288] sm:$0xf]  ;;  %v2770_v55 = vld [vmem:[%s4348_s1 + $0x290] sm:$0xf0]  ;;  %v2143_v58 = vor.u32 %v2746_v53, %v2142_v52  ;;  %v2695_v60 = vld [vmem:[%s4348_s1 + $0x38] sm:$0xf0] }
   0xf   :  { %1405 = vmatpush.bf16.msra.mxu3 %v2263_v38  ;;  %v2034_v61 = vld [vmem:[%s4348_s1 + $0xf0] sm:$0xf]  ;;  %v2239_v62 = vor.u32 %v2770_v55, %v2238_v54  ;;  %v2719_v63 = vld [vmem:[%s4348_s1 + $0xf8] sm:$0xf0]  ;;  %v1939_v4 = vor.u32 %v2695_v60, %v1938_v59  ;;  %v1926_v7 = vld [vmem:[%s4348_s1 + $0x18] sm:$0xf] }
  0x10   :  { %1364 = vmatpush.bf16.msra.mxu0 %v1963_v44  ;;  %v2130_v0 = vld [vmem:[%s4348_s1 + $0x1b0] sm:$0xf]  ;;  %v2743_v1 = vld [vmem:[%s4348_s1 + $0x1b8] sm:$0xf0]  ;;  %v2035_v5 = vor.u32 %v2719_v63, %v2034_v61  ;;  %v2692_v8 = vld [vmem:[%s4348_s1 + $0x20] sm:$0xf0] }
  0x11   :  { %1378 = vmatpush.bf16.msra.mxu1 %v2059_v45  ;;  %v2226_v2 = vld [vmem:[%s4348_s1 + $0x270] sm:$0xf]  ;;  %v2767_v3 = vld [vmem:[%s4348_s1 + $0x278] sm:$0xf0]  ;;  %v2131_v6 = vor.u32 %v2743_v1, %v2130_v0  ;;  %v2022_v9 = vld [vmem:[%s4348_s1 + $0xd8] sm:$0xf]  ;;  %v1927_v16 = vor.u32 %v2692_v8, %v1926_v7 }
  0x12   :  { %1392 = vmatpush.bf16.msra.mxu2 %v2155_v46  ;;  %v2227_v10 = vor.u32 %v2767_v3, %v2226_v2  ;;  %v2716_v11 = vld [vmem:[%s4348_s1 + $0xe0] sm:$0xf0]  ;;  %v2118_v12 = vld [vmem:[%s4348_s1 + $0x198] sm:$0xf]  ;;  %v1914_v17 = vld [vmem:[%s4348_s1] sm:$0xf] }
  0x13   :  { %1406 = vmatpush.bf16.msra.mxu3 %v2251_v50  ;;  %v2740_v13 = vld [vmem:[%s4348_s1 + $0x1a0] sm:$0xf0]  ;;  %v2214_v14 = vld [vmem:[%s4348_s1 + $0x258] sm:$0xf]  ;;  %v2689_v18 = vld [vmem:[%s4348_s1 + $0x8] sm:$0xf0]  ;;  %v2023_v19 = vor.u32 %v2716_v11, %v2022_v9 }
  0x14   :  { %1365 = vmatpush.bf16.msra.mxu0 %v1951_v56  ;;  %v2764_v15 = vld [vmem:[%s4348_s1 + $0x260] sm:$0xf0]  ;;  %v2119_v20 = vor.u32 %v2740_v13, %v2118_v12  ;;  %v2010_v21 = vld [vmem:[%s4348_s1 + $0xc0] sm:$0xf]  ;;  %v2713_v22 = vld [vmem:[%s4348_s1 + $0xc8] sm:$0xf0]  ;;  %v1915_v31 = vor.u32 %v2689_v18, %v1914_v17 }
  0x15   :  { %1379 = vmatpush.bf16.msra.mxu1 %v2047_v57  ;;  %v2106_v23 = vld [vmem:[%s4348_s1 + $0x180] sm:$0xf]  ;;  %v2215_v24 = vor.u32 %v2764_v15, %v2214_v14  ;;  %v2737_v25 = vld [vmem:[%s4348_s1 + $0x188] sm:$0xf0]  ;;  %v2382_v28 = vld [vmem:[%s4348_s1 + $0x3a8] sm:$0xf]  ;;  %v2011_v35 = vor.u32 %v2713_v22, %v2010_v21 }
  0x16   :  { %1393 = vmatpush.bf16.msra.mxu2 %v2143_v58  ;;  %v2202_v26 = vld [vmem:[%s4348_s1 + $0x240] sm:$0xf]  ;;  %v2761_v27 = vld [vmem:[%s4348_s1 + $0x248] sm:$0xf0]  ;;  %v2806_v29 = vld [vmem:[%s4348_s1 + $0x3b0] sm:$0xf0]  ;;  %v2107_v36 = vor.u32 %v2737_v25, %v2106_v23 }
  0x17   :  { %1407 = vmatpush.bf16.msra.mxu3 %v2239_v62  ;;  %v2478_v30 = vld [vmem:[%s4348_s1 + $0x468] sm:$0xf]  ;;  %v2830_v32 = vld [vmem:[%s4348_s1 + $0x470] sm:$0xf0]  ;;  %v2203_v39 = vor.u32 %v2761_v27, %v2202_v26  ;;  %v2383_v40 = vor.u32 %v2806_v29, %v2382_v28  ;;  %v2370_v41 = vld [vmem:[%s4348_s1 + $0x390] sm:$0xf] }
  0x18   :  { %1366 = vmatpush.bf16.msra.mxu0 %v1939_v4  ;;  %v2574_v33 = vld [vmem:[%s4348_s1 + $0x528] sm:$0xf]  ;;  %v2854_v34 = vld [vmem:[%s4348_s1 + $0x530] sm:$0xf0]  ;;  %v2803_v42 = vld [vmem:[%s4348_s1 + $0x398] sm:$0xf0]  ;;  %v2479_v43 = vor.u32 %v2830_v32, %v2478_v30 }
  0x19   :  { %1380 = vmatpush.bf16.msra.mxu1 %v2035_v5  ;;  %v2670_v37 = vld [vmem:[%s4348_s1 + $0x5e8] sm:$0xf]  ;;  %v2878_v38 = vld [vmem:[%s4348_s1 + $0x5f0] sm:$0xf0]  ;;  %v2575_v44 = vor.u32 %v2854_v34, %v2574_v33  ;;  %v2466_v45 = vld [vmem:[%s4348_s1 + $0x450] sm:$0xf]  ;;  %v2371_v55 = vor.u32 %v2803_v42, %v2370_v41 }
  0x1a   :  { %1394 = vmatpush.bf16.msra.mxu2 %v2131_v6  ;;  %v2827_v46 = vld [vmem:[%s4348_s1 + $0x458] sm:$0xf0]  ;;  %v2562_v47 = vld [vmem:[%s4348_s1 + $0x510] sm:$0xf]  ;;  %v2671_v48 = vor.u32 %v2878_v38, %v2670_v37  ;;  %v1882_v52 = vld [vmem:[%s4349_s0] sm:$0xf] }
  0x1b   :  { %1408 = vmatpush.bf16.msra.mxu3 %v2227_v10  ;;  %v2851_v49 = vld [vmem:[%s4348_s1 + $0x518] sm:$0xf0]  ;;  %v2658_v50 = vld [vmem:[%s4348_s1 + $0x5d0] sm:$0xf]  ;;  %v2684_v53 = vld [vmem:[%s4349_s0 + $0x1c] sm:$0xf0]  ;;  %v2467_v60 = vor.u32 %v2827_v46, %v2466_v45 }
  0x1c   :  { %1367 = vmatpush.bf16.msra.mxu0 %v1927_v16  ;;  %v2875_v51 = vld [vmem:[%s4348_s1 + $0x5d8] sm:$0xf0]  ;;  %v1890_v54 = vld [vmem:[%s4349_s0 + $0x8] sm:$0xf]  ;;  %v2358_v56 = vld [vmem:[%s4348_s1 + $0x378] sm:$0xf]  ;;  %v3224_v58 = vor.u32 %v2684_v53, %v1882_v52  ;;  %v2563_v61 = vor.u32 %v2851_v49, %v2562_v47 }
  0x1d   :  { %1381 = vmatpush.bf16.msra.mxu1 %v2023_v19  ;;  %v2800_v57 = vld [vmem:[%s4348_s1 + $0x380] sm:$0xf0]  ;;  %v2685_v59 = vld [vmem:[%s4349_s0 + $0x24] sm:$0xf0]  ;;  %v2454_v62 = vld [vmem:[%s4348_s1 + $0x438] sm:$0xf]  ;;  %v2659_v2 = vor.u32 %v2875_v51, %v2658_v50 }
  0x1e   :  { %1395 = vmatpush.bf16.msra.mxu2 %v2119_v20  ;;  %v2824_v63 = vld [vmem:[%s4348_s1 + $0x440] sm:$0xf0]  ;;  %v2550_v0 = vld [vmem:[%s4348_s1 + $0x4f8] sm:$0xf]  ;;  %v3238_v1 = vor.u32 %v2685_v59, %v1890_v54  ;;  %v2681_v8 = vld [vmem:[%s4349_s0 + $0xc] sm:$0xf]  ;;  %v2359_v9 = vor.u32 %v2800_v57, %v2358_v56 }
  0x1f   :  { %1409 = vmatpush.bf16.msra.mxu3 %v2215_v24  ;;  %v2848_v3 = vld [vmem:[%s4348_s1 + $0x500] sm:$0xf0]  ;;  %v2646_v4 = vld [vmem:[%s4348_s1 + $0x5b8] sm:$0xf]  ;;  %v1892_v11 = vld [vmem:[%s4349_s0 + $0x28] sm:$0xf0]  ;;  %v2455_v12 = vor.u32 %v2824_v63, %v2454_v62 }
  0x20   :  { %1368 = vmatpush.bf16.msra.mxu0 %v1915_v31  ;;  %v2872_v5 = vld [vmem:[%s4348_s1 + $0x5c0] sm:$0xf0]  ;;  %v2551_v13 = vor.u32 %v2848_v3, %v2550_v0  ;;  %v2346_v14 = vld [vmem:[%s4348_s1 + $0x360] sm:$0xf]  ;;  %v2797_v15 = vld [vmem:[%s4348_s1 + $0x368] sm:$0xf0]  ;;  %v3274_v17 = vor.u32 %v2681_v8, %v1892_v11 }
  0x21   :  { %1382 = vmatpush.bf16.msra.mxu1 %v2011_v35  ;;  %v2680_v6 = vld [vmem:[%s4349_s0 + $0x4] sm:$0xf]  ;;  %v2442_v16 = vld [vmem:[%s4348_s1 + $0x420] sm:$0xf]  ;;  %v2647_v18 = vor.u32 %v2872_v5, %v2646_v4  ;;  %v2821_v19 = vld [vmem:[%s4348_s1 + $0x428] sm:$0xf0]  ;;  %v2347_v24 = vor.u32 %v2797_v15, %v2346_v14 }
  0x22   :  { %1396 = vmatpush.bf16.msra.mxu2 %v2107_v36  ;;  %v1884_v7 = vld [vmem:[%s4349_s0 + $0x20] sm:$0xf0]  ;;  %v2538_v20 = vld [vmem:[%s4348_s1 + $0x4e0] sm:$0xf]  ;;  %v2845_v21 = vld [vmem:[%s4348_s1 + $0x4e8] sm:$0xf0]  ;;  %v2443_v25 = vor.u32 %v2821_v19, %v2442_v16 }
  0x23   :  { %1410 = vmatpush.bf16.msra.mxu3 %v2203_v39  ;;  %1369 = vmatmul.bf16.vlgmr.msra.gmra.mxu0 %v3224_v58  ;;  %v3260_v10 = vor.u32 %v2680_v6, %v1884_v7  ;;  %v2634_v22 = vld [vmem:[%s4348_s1 + $0x5a0] sm:$0xf]  ;;  %v2869_v23 = vld [vmem:[%s4348_s1 + $0x5a8] sm:$0xf0]  ;;  %v2539_v26 = vor.u32 %v2845_v21, %v2538_v20  ;;  %v2334_v27 = vld [vmem:[%s4348_s1 + $0x348] sm:$0xf] }
  0x24   :  { %1417 = vmatpush.bf16.msrb.mxu0 %v2383_v40  ;;  %v2794_v28 = vld [vmem:[%s4348_s1 + $0x350] sm:$0xf0]  ;;  %v2430_v29 = vld [vmem:[%s4348_s1 + $0x408] sm:$0xf]  ;;  %v2635_v30 = vor.u32 %v2869_v23, %v2634_v22  ;;  %v2322_v39 = vld [vmem:[%s4348_s1 + $0x330] sm:$0xf] }
  0x25   :  { %1431 = vmatpush.bf16.msrb.mxu1 %v2479_v43  ;;  %1397 = vmatmul.bf16.vlgmr.msra.gmra.mxu2 %v3238_v1  ;;  %v2818_v31 = vld [vmem:[%s4348_s1 + $0x410] sm:$0xf0]  ;;  %v2526_v32 = vld [vmem:[%s4348_s1 + $0x4c8] sm:$0xf]  ;;  %v2335_v36 = vor.u32 %v2794_v28, %v2334_v27  ;;  %v2791_v40 = vld [vmem:[%s4348_s1 + $0x338] sm:$0xf0] }
  0x26   :  { %1445 = vmatpush.bf16.msrb.mxu2 %v2575_v44  ;;  %1383 = vmatmul.bf16.vlgmr.msra.gmra.mxu1 %v3260_v10  ;;  %v2842_v33 = vld [vmem:[%s4348_s1 + $0x4d0] sm:$0xf0]  ;;  %v2622_v34 = vld [vmem:[%s4348_s1 + $0x588] sm:$0xf]  ;;  %v2431_v37 = vor.u32 %v2818_v31, %v2430_v29  ;;  %v2418_v41 = vld [vmem:[%s4348_s1 + $0x3f0] sm:$0xf] }
  0x27   :  { %1459 = vmatpush.bf16.msrb.mxu3 %v2671_v48  ;;  %v2866_v35 = vld [vmem:[%s4348_s1 + $0x590] sm:$0xf0]  ;;  %v2527_v38 = vor.u32 %v2842_v33, %v2526_v32  ;;  %v2815_v43 = vld [vmem:[%s4348_s1 + $0x3f8] sm:$0xf0]  ;;  %v2514_v44 = vld [vmem:[%s4348_s1 + $0x4b0] sm:$0xf]  ;;  %v2323_v48 = vor.u32 %v2791_v40, %v2322_v39 }
  0x28   :  { %1418 = vmatpush.bf16.msrb.mxu0 %v2371_v55  ;;  %1411 = vmatmul.bf16.vlgmr.msra.gmra.mxu3 %v3274_v17  ;;  %v2623_v42 = vor.u32 %v2866_v35, %v2622_v34  ;;  %v2839_v45 = vld [vmem:[%s4348_s1 + $0x4b8] sm:$0xf0]  ;;  %v2610_v46 = vld [vmem:[%s4348_s1 + $0x570] sm:$0xf]  ;;  %v2310_v49 = vld [vmem:[%s4348_s1 + $0x318] sm:$0xf]  ;;  %v2419_v50 = vor.u32 %v2815_v43, %v2418_v41 }
  0x29   :  { %1432 = vmatpush.bf16.msrb.mxu1 %v2467_v60  ;;  %v2863_v47 = vld [vmem:[%s4348_s1 + $0x578] sm:$0xf0]  ;;  %v2515_v51 = vor.u32 %v2839_v45, %v2514_v44  ;;  %v2788_v52 = vld [vmem:[%s4348_s1 + $0x320] sm:$0xf0]  ;;  %v2406_v53 = vld [vmem:[%s4348_s1 + $0x3d8] sm:$0xf] }
  0x2a   :  { %1446 = vmatpush.bf16.msrb.mxu2 %v2563_v61  ;;  %v2812_v54 = vld [vmem:[%s4348_s1 + $0x3e0] sm:$0xf0]  ;;  %v2611_v55 = vor.u32 %v2863_v47, %v2610_v46  ;;  %v2502_v56 = vld [vmem:[%s4348_s1 + $0x498] sm:$0xf]  ;;  %v2298_v61 = vld [vmem:[%s4348_s1 + $0x300] sm:$0xf]  ;;  %v2311_v63 = vor.u32 %v2788_v52, %v2310_v49 }
  0x2b   :  { %1460 = vmatpush.bf16.msrb.mxu3 %v2659_v2  ;;  %v2836_v57 = vld [vmem:[%s4348_s1 + $0x4a0] sm:$0xf0]  ;;  %v2598_v59 = vld [vmem:[%s4348_s1 + $0x558] sm:$0xf]  ;;  %v2785_v62 = vld [vmem:[%s4348_s1 + $0x308] sm:$0xf0]  ;;  %v2407_v5 = vor.u32 %v2812_v54, %v2406_v53 }
  0x2c   :  { %1419 = vmatpush.bf16.msrb.mxu0 %v2359_v9  ;;  %v2860_v60 = vld [vmem:[%s4348_s1 + $0x560] sm:$0xf0]  ;;  %v2394_v0 = vld [vmem:[%s4348_s1 + $0x3c0] sm:$0xf]  ;;  %v2809_v2 = vld [vmem:[%s4348_s1 + $0x3c8] sm:$0xf0]  ;;  %v2503_v6 = vor.u32 %v2836_v57, %v2502_v56  ;;  %v2299_v19 = vor.u32 %v2785_v62, %v2298_v61 }
  0x2d   :  { %1433 = vmatpush.bf16.msrb.mxu1 %v2455_v12  ;;  %v2490_v3 = vld [vmem:[%s4348_s1 + $0x480] sm:$0xf]  ;;  %v2833_v4 = vld [vmem:[%s4348_s1 + $0x488] sm:$0xf0]  ;;  %v2599_v11 = vor.u32 %v2860_v60, %v2598_v59  ;;  %v2000_v12 = vld [vmem:[%s4348_s1 + $0xb4] sm:$0xf0]  ;;  %v2395_v23 = vor.u32 %v2809_v2, %v2394_v0 }
  0x2e   :  { %1447 = vmatpush.bf16.msrb.mxu2 %v2551_v13  ;;  %v2586_v7 = vld [vmem:[%s4348_s1 + $0x540] sm:$0xf]  ;;  %v2857_v8 = vld [vmem:[%s4348_s1 + $0x548] sm:$0xf0]  ;;  %v2096_v14 = vld [vmem:[%s4348_s1 + $0x174] sm:$0xf0] }
  0x2f   :  { %1461 = vmatpush.bf16.msrb.mxu3 %v2647_v18  ;;  %v2709_v9 = vld [vmem:[%s4348_s1 + $0xac] sm:$0xf]  ;;  %v2192_v16 = vld [vmem:[%s4348_s1 + $0x234] sm:$0xf0]  ;;  %v1898_v21 = vld [vmem:[%s4349_s0 + $0x10] sm:$0xf]  ;;  %v2587_v28 = vor.u32 %v2857_v8, %v2586_v7 }
  0x30   :  { %1420 = vmatpush.bf16.msrb.mxu0 %v2347_v24  ;;  %v2733_v13 = vld [vmem:[%s4348_s1 + $0x16c] sm:$0xf]  ;;  %v2288_v20 = vld [vmem:[%s4348_s1 + $0x2f4] sm:$0xf0]  ;;  %v2686_v22 = vld [vmem:[%s4349_s0 + $0x2c] sm:$0xf0]  ;;  %v2491_v24 = vor.u32 %v2833_v4, %v2490_v3  ;;  %v2003_v29 = vor.u32 %v2709_v9, %v2000_v12 }
  0x31   :  { %1434 = vmatpush.bf16.msrb.mxu1 %v2443_v25  ;;  %v2757_v15 = vld [vmem:[%s4348_s1 + $0x22c] sm:$0xf]  ;;  %v1906_v25 = vld [vmem:[%s4349_s0 + $0x18] sm:$0xf]  ;;  %v2682_v27 = vld [vmem:[%s4349_s0 + $0x14] sm:$0xf]  ;;  %v2099_v33 = vor.u32 %v2733_v13, %v2096_v14  ;;  %v3446_v39 = vor.u32 %v2686_v22, %v1898_v21 }
  0x32   :  { %1448 = vmatpush.bf16.msrb.mxu2 %v2539_v26  ;;  %v2781_v18 = vld [vmem:[%s4348_s1 + $0x2ec] sm:$0xf]  ;;  %v2687_v26 = vld [vmem:[%s4349_s0 + $0x34] sm:$0xf0]  ;;  %v2683_v31 = vld [vmem:[%s4349_s0 + $0x1c] sm:$0xf]  ;;  %v2195_v34 = vor.u32 %v2757_v15, %v2192_v16 }
  0x33   :  { %1462 = vmatpush.bf16.msrb.mxu3 %v2635_v30  ;;  %v1900_v30 = vld [vmem:[%s4349_s0 + $0x30] sm:$0xf0]  ;;  %v1908_v32 = vld [vmem:[%s4349_s0 + $0x38] sm:$0xf0]  ;;  %v2084_v40 = vld [vmem:[%s4348_s1 + $0x15c] sm:$0xf0]  ;;  %v3457_v43 = vor.u32 %v2687_v26, %v1906_v25 }
  0x34   :  { %1421 = vmatpush.bf16.msrb.mxu0 %v2335_v36  ;;  %v2706_v35 = vld [vmem:[%s4348_s1 + $0x94] sm:$0xf]  ;;  %v1988_v36 = vld [vmem:[%s4348_s1 + $0x9c] sm:$0xf0]  ;;  %v3459_v44 = vor.u32 %v2682_v27, %v1900_v30  ;;  %v3467_v47 = vor.u32 %v2683_v31, %v1908_v32  ;;  %v1976_v52 = vld [vmem:[%s4348_s1 + $0x84] sm:$0xf0] }
  0x35   :  { %1435 = vmatpush.bf16.msrb.mxu1 %v2431_v37  ;;  %v2730_v37 = vld [vmem:[%s4348_s1 + $0x154] sm:$0xf]  ;;  %v2276_v46 = vld [vmem:[%s4348_s1 + $0x2dc] sm:$0xf0]  ;;  %v2727_v53 = vld [vmem:[%s4348_s1 + $0x13c] sm:$0xf] }
  0x36   :  { %1449 = vmatpush.bf16.msrb.mxu2 %v2527_v38  ;;  %v2291_v38 = vor.u32 %v2781_v18, %v2288_v20  ;;  %v2754_v41 = vld [vmem:[%s4348_s1 + $0x214] sm:$0xf]  ;;  %v2087_v49 = vor.u32 %v2730_v37, %v2084_v40  ;;  %v2751_v56 = vld [vmem:[%s4348_s1 + $0x1fc] sm:$0xf]  ;;  %v2168_v57 = vld [vmem:[%s4348_s1 + $0x204] sm:$0xf0] }
  0x37   :  { %1463 = vmatpush.bf16.msrb.mxu3 %v2623_v42  ;;  %v2180_v42 = vld [vmem:[%s4348_s1 + $0x21c] sm:$0xf0]  ;;  %v2778_v45 = vld [vmem:[%s4348_s1 + $0x2d4] sm:$0xf]  ;;  %v2775_v59 = vld [vmem:[%s4348_s1 + $0x2bc] sm:$0xf] }
  0x38   :  { %1422 = vmatpush.bf16.msrb.mxu0 %v2323_v48  ;;  %v1991_v48 = vor.u32 %v2706_v35, %v1988_v36  ;;  %v2279_v54 = vor.u32 %v2778_v45, %v2276_v46  ;;  %v2264_v60 = vld [vmem:[%s4348_s1 + $0x2c4] sm:$0xf0]  ;;  %v2700_v0 = vld [vmem:[%s4348_s1 + $0x64] sm:$0xf]  ;;  %v1964_v2 = vld [vmem:[%s4348_s1 + $0x6c] sm:$0xf0] }
  0x39   :  { %1436 = vmatpush.bf16.msrb.mxu1 %v2419_v50  ;;  %v2183_v50 = vor.u32 %v2754_v41, %v2180_v42  ;;  %v2724_v3 = vld [vmem:[%s4348_s1 + $0x124] sm:$0xf]  ;;  %v2267_v4 = vor.u32 %v2775_v59, %v2264_v60  ;;  %v2156_v7 = vld [vmem:[%s4348_s1 + $0x1ec] sm:$0xf0]  ;;  %v2697_v14 = vld [vmem:[%s4348_s1 + $0x4c] sm:$0xf] }
  0x3a   :  { %1450 = vmatpush.bf16.msrb.mxu2 %v2515_v51  ;;  %v2703_v51 = vld [vmem:[%s4348_s1 + $0x7c] sm:$0xf]  ;;  %v2772_v8 = vld [vmem:[%s4348_s1 + $0x2a4] sm:$0xf]  ;;  %v2252_v9 = vld [vmem:[%s4348_s1 + $0x2ac] sm:$0xf0] }
  0x3b   :  { %1464 = vmatpush.bf16.msrb.mxu3 %v2611_v55  ;;  %v2072_v55 = vld [vmem:[%s4348_s1 + $0x144] sm:$0xf0]  ;;  %v1979_v61 = vor.u32 %v2703_v51, %v1976_v52  ;;  %v1952_v15 = vld [vmem:[%s4348_s1 + $0x54] sm:$0xf0]  ;;  %v2721_v16 = vld [vmem:[%s4348_s1 + $0x10c] sm:$0xf]  ;;  %v2255_v18 = vor.u32 %v2772_v8, %v2252_v9 }
  0x3c   :  { %1423 = vmatpush.bf16.msrb.mxu0 %v2311_v63  ;;  %v2075_v62 = vor.u32 %v2727_v53, %v2072_v55  ;;  %v2171_v63 = vor.u32 %v2751_v56, %v2168_v57  ;;  %v2745_v20 = vld [vmem:[%s4348_s1 + $0x1cc] sm:$0xf]  ;;  %v2144_v21 = vld [vmem:[%s4348_s1 + $0x1d4] sm:$0xf0]  ;;  %v2694_v27 = vld [vmem:[%s4348_s1 + $0x34] sm:$0xf] }
  0x3d   :  { %1437 = vmatpush.bf16.msrb.mxu1 %v2407_v5  ;;  %v2060_v5 = vld [vmem:[%s4348_s1 + $0x12c] sm:$0xf0]  ;;  %v2769_v22 = vld [vmem:[%s4348_s1 + $0x28c] sm:$0xf]  ;;  %v2147_v26 = vor.u32 %v2745_v20, %v2144_v21  ;;  %v2036_v31 = vld [vmem:[%s4348_s1 + $0xfc] sm:$0xf0] }
  0x3e   :  { %1451 = vmatpush.bf16.msrb.mxu2 %v2503_v6  ;;  %v2748_v6 = vld [vmem:[%s4348_s1 + $0x1e4] sm:$0xf]  ;;  %v2063_v12 = vor.u32 %v2724_v3, %v2060_v5  ;;  %v2742_v32 = vld [vmem:[%s4348_s1 + $0x1b4] sm:$0xf]  ;;  %v2228_v35 = vld [vmem:[%s4348_s1 + $0x27c] sm:$0xf0] }
  0x3f   :  { %1465 = vmatpush.bf16.msrb.mxu3 %v2599_v11  ;;  %v1967_v11 = vor.u32 %v2700_v0, %v1964_v2  ;;  %v2159_v13 = vor.u32 %v2748_v6, %v2156_v7  ;;  %v2691_v40 = vld [vmem:[%s4348_s1 + $0x1c] sm:$0xf]  ;;  %v1928_v41 = vld [vmem:[%s4348_s1 + $0x24] sm:$0xf0]  ;;  %v2688_v53 = vld [vmem:[%s4348_s1 + $0x4] sm:$0xf] }
  0x40   :  { %1424 = vmatpush.bf16.msrb.mxu0 %v2299_v19  ;;  %v2048_v19 = vld [vmem:[%s4348_s1 + $0x114] sm:$0xf0]  ;;  %v2715_v42 = vld [vmem:[%s4348_s1 + $0xdc] sm:$0xf]  ;;  %v2024_v46 = vld [vmem:[%s4348_s1 + $0xe4] sm:$0xf0]  ;;  %v1931_v52 = vor.u32 %v2691_v40, %v1928_v41 }
  0x41   :  { %1438 = vmatpush.bf16.msrb.mxu1 %v2395_v23  ;;  %v2240_v23 = vld [vmem:[%s4348_s1 + $0x294] sm:$0xf0]  ;;  %v2051_v25 = vor.u32 %v2721_v16, %v2048_v19  ;;  %v2216_v51 = vld [vmem:[%s4348_s1 + $0x264] sm:$0xf0]  ;;  %v2027_v55 = vor.u32 %v2715_v42, %v2024_v46  ;;  %v2712_v57 = vld [vmem:[%s4348_s1 + $0xc4] sm:$0xf] }
  0x42   :  { %1452 = vmatpush.bf16.msrb.mxu2 %v2491_v24  ;;  %v1955_v24 = vor.u32 %v2697_v14, %v1952_v15  ;;  %v2243_v30 = vor.u32 %v2769_v22, %v2240_v23  ;;  %v2012_v59 = vld [vmem:[%s4348_s1 + $0xcc] sm:$0xf0]  ;;  %v2736_v60 = vld [vmem:[%s4348_s1 + $0x184] sm:$0xf]  ;;  %v2805_v2 = vld [vmem:[%s4348_s1 + $0x3ac] sm:$0xf] }
  0x43   :  { %1466 = vmatpush.bf16.msrb.mxu3 %v2587_v28  ;;  %1425 = vmatmul.bf16.vlgmr.msrb.gmra.mxu0 %v3446_v39  ;;  %v1940_v28 = vld [vmem:[%s4348_s1 + $0x3c] sm:$0xf0]  ;;  %v2204_v0 = vld [vmem:[%s4348_s1 + $0x24c] sm:$0xf0]  ;;  %v2384_v3 = vld [vmem:[%s4348_s1 + $0x3b4] sm:$0xf0]  ;;  %v2015_v9 = vor.u32 %v2712_v57, %v2012_v59 }
  0x44   :  { %1473 = vmatpush.bf16.msra.mxu0 %v2003_v29  ;;  %1439 = vmatmul.bf16.vlgmr.msrb.gmra.mxu1 %v3459_v44  ;;  %v2718_v29 = vld [vmem:[%s4348_s1 + $0xf4] sm:$0xf]  ;;  %v1943_v36 = vor.u32 %v2694_v27, %v1940_v28  ;;  %v2480_v6 = vld [vmem:[%s4348_s1 + $0x474] sm:$0xf0]  ;;  %v2853_v7 = vld [vmem:[%s4348_s1 + $0x52c] sm:$0xf]  ;;  %v2387_v15 = vor.u32 %v2805_v2, %v2384_v3 }
  0x45   :  { %1487 = vmatpush.bf16.msra.mxu1 %v2099_v33  ;;  %1453 = vmatmul.bf16.vlgmr.msrb.gmra.mxu2 %v3457_v43  ;;  %v2132_v33 = vld [vmem:[%s4348_s1 + $0x1bc] sm:$0xf0]  ;;  %v2039_v37 = vor.u32 %v2718_v29, %v2036_v31  ;;  %v2576_v8 = vld [vmem:[%s4348_s1 + $0x534] sm:$0xf0]  ;;  %v2802_v19 = vld [vmem:[%s4348_s1 + $0x394] sm:$0xf] }
  0x46   :  { %1501 = vmatpush.bf16.msra.mxu2 %v2195_v34  ;;  %1467 = vmatmul.bf16.vlgmr.msrb.gmra.mxu3 %v3467_v47  ;;  %v2766_v34 = vld [vmem:[%s4348_s1 + $0x274] sm:$0xf]  ;;  %v2372_v20 = vld [vmem:[%s4348_s1 + $0x39c] sm:$0xf0]  ;;  %v2799_v31 = vld [vmem:[%s4348_s1 + $0x37c] sm:$0xf] }
  0x47   :  { %1515 = vmatpush.bf16.msra.mxu3 %v2291_v38  ;;  %v2135_v38 = vor.u32 %v2742_v32, %v2132_v33  ;;  %v2231_v45 = vor.u32 %v2766_v34, %v2228_v35  ;;  %v2826_v21 = vld [vmem:[%s4348_s1 + $0x454] sm:$0xf]  ;;  %v2468_v23 = vld [vmem:[%s4348_s1 + $0x45c] sm:$0xf0]  ;;  %v2375_v28 = vor.u32 %v2802_v19, %v2372_v20  ;;  %v2360_v32 = vld [vmem:[%s4348_s1 + $0x384] sm:$0xf0] }
  0x48   :  { %1474 = vmatpush.bf16.msra.mxu0 %v1991_v48  ;;  %v2739_v48 = vld [vmem:[%s4348_s1 + $0x19c] sm:$0xf]  ;;  %v2660_v27 = vld [vmem:[%s4348_s1 + $0x5dc] sm:$0xf0]  ;;  %v2471_v29 = vor.u32 %v2826_v21, %v2468_v23  ;;  %v2456_v35 = vld [vmem:[%s4348_s1 + $0x444] sm:$0xf0]  ;;  %v2363_v41 = vor.u32 %v2799_v31, %v2360_v32 }
  0x49   :  { %1488 = vmatpush.bf16.msra.mxu1 %v2087_v49  ;;  %v2120_v49 = vld [vmem:[%s4348_s1 + $0x1a4] sm:$0xf0]  ;;  %v2823_v33 = vld [vmem:[%s4348_s1 + $0x43c] sm:$0xf]  ;;  %v2796_v46 = vld [vmem:[%s4348_s1 + $0x364] sm:$0xf] }
  0x4a   :  { %1502 = vmatpush.bf16.msra.mxu2 %v2183_v50  ;;  %v2763_v50 = vld [vmem:[%s4348_s1 + $0x25c] sm:$0xf]  ;;  %v2123_v56 = vor.u32 %v2739_v48, %v2120_v49  ;;  %v2648_v40 = vld [vmem:[%s4348_s1 + $0x5c4] sm:$0xf0]  ;;  %v2459_v42 = vor.u32 %v2823_v33, %v2456_v35  ;;  %v2348_v48 = vld [vmem:[%s4348_s1 + $0x36c] sm:$0xf0] }
  0x4b   :  { %1516 = vmatpush.bf16.msra.mxu3 %v2279_v54  ;;  %v1916_v54 = vld [vmem:[%s4348_s1 + $0xc] sm:$0xf0]  ;;  %v2820_v49 = vld [vmem:[%s4348_s1 + $0x424] sm:$0xf]  ;;  %v2841_v2 = vld [vmem:[%s4348_s1 + $0x4cc] sm:$0xf] }
  0x4c   :  { %1475 = vmatpush.bf16.msra.mxu0 %v1979_v61  ;;  %v2219_v61 = vor.u32 %v2763_v50, %v2216_v51  ;;  %v1919_v5 = vor.u32 %v2688_v53, %v1916_v54  ;;  %v2444_v51 = vld [vmem:[%s4348_s1 + $0x42c] sm:$0xf0]  ;;  %v2868_v54 = vld [vmem:[%s4348_s1 + $0x5a4] sm:$0xf]  ;;  %v2528_v3 = vld [vmem:[%s4348_s1 + $0x4d4] sm:$0xf0] }
  0x4d   :  { %1489 = vmatpush.bf16.msra.mxu1 %v2075_v62  ;;  %v2108_v62 = vld [vmem:[%s4348_s1 + $0x18c] sm:$0xf0]  ;;  %v2447_v57 = vor.u32 %v2820_v49, %v2444_v51  ;;  %v2612_v19 = vld [vmem:[%s4348_s1 + $0x57c] sm:$0xf0]  ;;  %v2787_v23 = vld [vmem:[%s4348_s1 + $0x31c] sm:$0xf] }
  0x4e   :  { %1503 = vmatpush.bf16.msra.mxu2 %v2171_v63  ;;  %v2760_v63 = vld [vmem:[%s4348_s1 + $0x244] sm:$0xf]  ;;  %v2540_v53 = vld [vmem:[%s4348_s1 + $0x4ec] sm:$0xf0]  ;;  %v2600_v31 = vld [vmem:[%s4348_s1 + $0x564] sm:$0xf0] }
  0x4f   :  { %1517 = vmatpush.bf16.msra.mxu3 %v2267_v4  ;;  %v2829_v4 = vld [vmem:[%s4348_s1 + $0x46c] sm:$0xf]  ;;  %v2207_v14 = vor.u32 %v2760_v63, %v2204_v0  ;;  %v2432_v0 = vld [vmem:[%s4348_s1 + $0x414] sm:$0xf0]  ;;  %v2784_v33 = vld [vmem:[%s4348_s1 + $0x304] sm:$0xf] }
  0x50   :  { %1476 = vmatpush.bf16.msra.mxu0 %v1967_v11  ;;  %v2111_v11 = vor.u32 %v2736_v60, %v2108_v62  ;;  %v2483_v16 = vor.u32 %v2829_v4, %v2480_v6  ;;  %v2793_v60 = vld [vmem:[%s4348_s1 + $0x34c] sm:$0xf]  ;;  %v2711_v49 = vld [vmem:[%s4348_s1 + $0xb8] sm:$0xf0]  ;;  %v2198_v51 = vld [vmem:[%s4348_s1 + $0x230] sm:$0xf] }
  0x51   :  { %1490 = vmatpush.bf16.msra.mxu1 %v2063_v12  ;;  %v2877_v12 = vld [vmem:[%s4348_s1 + $0x5ec] sm:$0xf] }
  0x52   :  { %1504 = vmatpush.bf16.msra.mxu2 %v2159_v13  ;;  %v2672_v13 = vld [vmem:[%s4348_s1 + $0x5f4] sm:$0xf0]  ;;  %v2817_v62 = vld [vmem:[%s4348_s1 + $0x40c] sm:$0xf] }
  0x53   :  { %1518 = vmatpush.bf16.msra.mxu3 %v2255_v18  ;;  %v2579_v18 = vor.u32 %v2853_v7, %v2576_v8  ;;  %v2675_v22 = vor.u32 %v2877_v12, %v2672_v13  ;;  %v2865_v4 = vld [vmem:[%s4348_s1 + $0x58c] sm:$0xf]  ;;  %v2435_v7 = vor.u32 %v2817_v62, %v2432_v0  ;;  %v2531_v8 = vor.u32 %v2841_v2, %v2528_v3  ;;  %v2814_v12 = vld [vmem:[%s4348_s1 + $0x3f4] sm:$0xf]  ;;  %v2756_v62 = vld [vmem:[%s4348_s1 + $0x220] sm:$0xf0] }
  0x54   :  { %1477 = vmatpush.bf16.msra.mxu0 %v1955_v24  ;;  %v2850_v24 = vld [vmem:[%s4348_s1 + $0x514] sm:$0xf]  ;;  %v1982_v2 = vld [vmem:[%s4348_s1 + $0x80] sm:$0xf]  ;;  %v2705_v3 = vld [vmem:[%s4348_s1 + $0x88] sm:$0xf0] }
  0x55   :  { %1491 = vmatpush.bf16.msra.mxu1 %v2051_v25  ;;  %v2564_v25 = vld [vmem:[%s4348_s1 + $0x51c] sm:$0xf0] }
  0x56   :  { %1505 = vmatpush.bf16.msra.mxu2 %v2147_v26  ;;  %v2874_v26 = vld [vmem:[%s4348_s1 + $0x5d4] sm:$0xf] }
  0x57   :  { %1519 = vmatpush.bf16.msra.mxu3 %v2243_v30  ;;  %v2567_v30 = vor.u32 %v2850_v24, %v2564_v25  ;;  %v2663_v34 = vor.u32 %v2874_v26, %v2660_v27  ;;  %v2312_v24 = vld [vmem:[%s4348_s1 + $0x324] sm:$0xf0]  ;;  %v2811_v25 = vld [vmem:[%s4348_s1 + $0x3dc] sm:$0xf] }
  0x58   :  { %1478 = vmatpush.bf16.msra.mxu0 %v1943_v36  ;;  %v2847_v36 = vld [vmem:[%s4348_s1 + $0x4fc] sm:$0xf]  ;;  %v2408_v27 = vld [vmem:[%s4348_s1 + $0x3e4] sm:$0xf0]  ;;  %v2315_v32 = vor.u32 %v2787_v23, %v2312_v24  ;;  %v2696_v23 = vld [vmem:[%s4348_s1 + $0x40] sm:$0xf0] }
  0x59   :  { %1492 = vmatpush.bf16.msra.mxu1 %v2039_v37  ;;  %v2552_v37 = vld [vmem:[%s4348_s1 + $0x504] sm:$0xf0]  ;;  %v2138_v24 = vld [vmem:[%s4348_s1 + $0x1b8] sm:$0xf] }
  0x5a   :  { %1506 = vmatpush.bf16.msra.mxu2 %v2135_v38  ;;  %v2871_v38 = vld [vmem:[%s4348_s1 + $0x5bc] sm:$0xf] }
  0x5b   :  { %1520 = vmatpush.bf16.msra.mxu3 %v2231_v45  ;;  %v2555_v45 = vor.u32 %v2847_v36, %v2552_v37  ;;  %v2651_v50 = vor.u32 %v2871_v38, %v2648_v40  ;;  %v2300_v36 = vld [vmem:[%s4348_s1 + $0x30c] sm:$0xf0]  ;;  %v2808_v37 = vld [vmem:[%s4348_s1 + $0x3c4] sm:$0xf] }
  0x5c   :  { %1479 = vmatpush.bf16.msra.mxu0 %v1931_v52  ;;  %v2844_v52 = vld [vmem:[%s4348_s1 + $0x4e4] sm:$0xf]  ;;  %v2396_v38 = vld [vmem:[%s4348_s1 + $0x3cc] sm:$0xf0] }
  0x5d   :  { %1493 = vmatpush.bf16.msra.mxu1 %v2027_v55  ;;  %v2636_v55 = vld [vmem:[%s4348_s1 + $0x5ac] sm:$0xf0]  ;;  %v2543_v59 = vor.u32 %v2844_v52, %v2540_v53  ;;  %v2759_v52 = vld [vmem:[%s4348_s1 + $0x238] sm:$0xf0]  ;;  %v2399_v53 = vor.u32 %v2808_v37, %v2396_v38  ;;  %v2690_v37 = vld [vmem:[%s4348_s1 + $0x10] sm:$0xf0] }
  0x5e   :  { %1507 = vmatpush.bf16.msra.mxu2 %v2123_v56  ;;  %v2351_v56 = vor.u32 %v2796_v46, %v2348_v48  ;;  %v2639_v63 = vor.u32 %v2868_v54, %v2636_v55  ;;  %v2588_v46 = vld [vmem:[%s4348_s1 + $0x54c] sm:$0xf0] }
  0x5f   :  { %1521 = vmatpush.bf16.msra.mxu3 %v2219_v61  ;;  %v2336_v61 = vld [vmem:[%s4348_s1 + $0x354] sm:$0xf0]  ;;  %v2006_v48 = vld [vmem:[%s4348_s1 + $0xb0] sm:$0xf] }
  0x60   :  { %1480 = vmatpush.bf16.msra.mxu0 %v1919_v5  ;;  %v2624_v5 = vld [vmem:[%s4348_s1 + $0x594] sm:$0xf0]  ;;  %v2339_v6 = vor.u32 %v2793_v60, %v2336_v61  ;;  %v2708_v60 = vld [vmem:[%s4348_s1 + $0xa0] sm:$0xf0]  ;;  %v2390_v38 = vld [vmem:[%s4348_s1 + $0x3b0] sm:$0xf] }
  0x61   :  { %1494 = vmatpush.bf16.msra.mxu1 %v2015_v9  ;;  %v2790_v9 = vld [vmem:[%s4348_s1 + $0x334] sm:$0xf]  ;;  %v2627_v13 = vor.u32 %v2865_v4, %v2624_v5  ;;  %v2186_v61 = vld [vmem:[%s4348_s1 + $0x218] sm:$0xf]  ;;  %v2174_v4 = vld [vmem:[%s4348_s1 + $0x200] sm:$0xf] }
  0x62   :  { %1508 = vmatpush.bf16.msra.mxu2 %v2111_v11  ;;  %v2324_v11 = vld [vmem:[%s4348_s1 + $0x33c] sm:$0xf0]  ;;  %v2187_v0 = vor.u32 %v2756_v62, %v2186_v61  ;;  %v2753_v5 = vld [vmem:[%s4348_s1 + $0x208] sm:$0xf0]  ;;  %v2804_v61 = vld [vmem:[%s4348_s1 + $0x3a0] sm:$0xf0] }
  0x63   :  { %1522 = vmatpush.bf16.msra.mxu3 %v2207_v14  ;;  %1481 = vmatmul.bf16.vlgmr.msra.gmra.mxu0 %v3224_v58  ;;  %v2420_v14 = vld [vmem:[%s4348_s1 + $0x3fc] sm:$0xf0]  ;;  %v2327_v20 = vor.u32 %v2790_v9, %v2324_v11  ;;  %v2702_v9 = vld [vmem:[%s4348_s1 + $0x70] sm:$0xf0]  ;;  %v2162_v11 = vld [vmem:[%s4348_s1 + $0x1e8] sm:$0xf] }
  0x64   :  { %1529 = vmatpush.bf16.msrb.mxu0 %v2387_v15  ;;  %1495 = vmatmul.bf16.vlgmr.msra.gmra.mxu1 %v3260_v10  ;;  %v2838_v15 = vld [vmem:[%s4348_s1 + $0x4b4] sm:$0xf]  ;;  %v2423_v21 = vor.u32 %v2814_v12, %v2420_v14  ;;  %v2078_v62 = vld [vmem:[%s4348_s1 + $0x140] sm:$0xf] }
  0x65   :  { %1543 = vmatpush.bf16.msrb.mxu1 %v2483_v16  ;;  %1509 = vmatmul.bf16.vlgmr.msra.gmra.mxu2 %v3238_v1  ;;  %v2516_v16 = vld [vmem:[%s4348_s1 + $0x4bc] sm:$0xf0]  ;;  %v2750_v12 = vld [vmem:[%s4348_s1 + $0x1f0] sm:$0xf0] }
  0x66   :  { %1557 = vmatpush.bf16.msrb.mxu2 %v2579_v18  ;;  %1523 = vmatmul.bf16.vlgmr.msra.gmra.mxu3 %v3274_v17  ;;  %v2862_v18 = vld [vmem:[%s4348_s1 + $0x574] sm:$0xf]  ;;  %v2163_v14 = vor.u32 %v2750_v12, %v2162_v11  ;;  %v2801_v11 = vld [vmem:[%s4348_s1 + $0x388] sm:$0xf0]  ;;  %v2066_v12 = vld [vmem:[%s4348_s1 + $0x128] sm:$0xf] }
  0x67   :  { %1571 = vmatpush.bf16.msrb.mxu3 %v2675_v22  ;;  %v2519_v22 = vor.u32 %v2838_v15, %v2516_v16  ;;  %v2615_v26 = vor.u32 %v2862_v18, %v2612_v19  ;;  %v1958_v15 = vld [vmem:[%s4348_s1 + $0x50] sm:$0xf]  ;;  %v2699_v16 = vld [vmem:[%s4348_s1 + $0x58] sm:$0xf0] }
  0x68   :  { %1530 = vmatpush.bf16.msrb.mxu0 %v2375_v28  ;;  %v2835_v28 = vld [vmem:[%s4348_s1 + $0x49c] sm:$0xf]  ;;  %v2150_v18 = vld [vmem:[%s4348_s1 + $0x1d0] sm:$0xf] }
  0x69   :  { %1544 = vmatpush.bf16.msrb.mxu1 %v2471_v29  ;;  %v2504_v29 = vld [vmem:[%s4348_s1 + $0x4a4] sm:$0xf0]  ;;  %v2747_v19 = vld [vmem:[%s4348_s1 + $0x1d8] sm:$0xf0] }
  0x6a   :  { %1558 = vmatpush.bf16.msrb.mxu2 %v2567_v30  ;;  %v2859_v30 = vld [vmem:[%s4348_s1 + $0x55c] sm:$0xf]  ;;  %v2507_v35 = vor.u32 %v2835_v28, %v2504_v29  ;;  %v1934_v28 = vld [vmem:[%s4348_s1 + $0x20] sm:$0xf]  ;;  %v2693_v29 = vld [vmem:[%s4348_s1 + $0x28] sm:$0xf0] }
  0x6b   :  { %1572 = vmatpush.bf16.msrb.mxu3 %v2663_v34  ;;  %v2411_v34 = vor.u32 %v2811_v25, %v2408_v27  ;;  %v2603_v40 = vor.u32 %v2859_v30, %v2600_v31  ;;  %v2744_v25 = vld [vmem:[%s4348_s1 + $0x1c0] sm:$0xf0]  ;;  %v2126_v30 = vld [vmem:[%s4348_s1 + $0x1a0] sm:$0xf]  ;;  %v2741_v31 = vld [vmem:[%s4348_s1 + $0x1a8] sm:$0xf0] }
  0x6c   :  { %1531 = vmatpush.bf16.msrb.mxu0 %v2363_v41  ;;  %v2832_v41 = vld [vmem:[%s4348_s1 + $0x484] sm:$0xf]  ;;  %v2139_v27 = vor.u32 %v2744_v25, %v2138_v24 }
  0x6d   :  { %1545 = vmatpush.bf16.msrb.mxu1 %v2459_v42  ;;  %v2492_v42 = vld [vmem:[%s4348_s1 + $0x48c] sm:$0xf0] }
  0x6e   :  { %1559 = vmatpush.bf16.msrb.mxu2 %v2555_v45  ;;  %v2856_v45 = vld [vmem:[%s4348_s1 + $0x544] sm:$0xf]  ;;  %v2495_v54 = vor.u32 %v2832_v41, %v2492_v42  ;;  %v2807_v41 = vld [vmem:[%s4348_s1 + $0x3b8] sm:$0xf0]  ;;  %v2114_v42 = vld [vmem:[%s4348_s1 + $0x188] sm:$0xf] }
  0x6f   :  { %1573 = vmatpush.bf16.msrb.mxu3 %v2651_v50  ;;  %v2303_v50 = vor.u32 %v2784_v33, %v2300_v36  ;;  %v2591_v55 = vor.u32 %v2856_v45, %v2588_v46  ;;  %v2735_v33 = vld [vmem:[%s4348_s1 + $0x178] sm:$0xf0]  ;;  %v1922_v36 = vld [vmem:[%s4348_s1 + $0x8] sm:$0xf]  ;;  %v2738_v45 = vld [vmem:[%s4348_s1 + $0x190] sm:$0xf0] }
  0x70   :  { %1532 = vmatpush.bf16.msrb.mxu0 %v2351_v56  ;;  %v2007_v56 = vor.u32 %v2711_v49, %v2006_v48  ;;  %v2090_v46 = vld [vmem:[%s4348_s1 + $0x158] sm:$0xf]  ;;  %v2732_v48 = vld [vmem:[%s4348_s1 + $0x160] sm:$0xf0]  ;;  %v2294_v49 = vld [vmem:[%s4348_s1 + $0x2f0] sm:$0xf] }
  0x71   :  { %1546 = vmatpush.bf16.msrb.mxu1 %v2447_v57  ;;  %v2199_v57 = vor.u32 %v2759_v52, %v2198_v51  ;;  %v2855_v51 = vld [vmem:[%s4348_s1 + $0x538] sm:$0xf0]  ;;  %v2091_v52 = vor.u32 %v2732_v48, %v2090_v46  ;;  %v2720_v46 = vld [vmem:[%s4348_s1 + $0x100] sm:$0xf0] }
  0x72   :  { %1560 = vmatpush.bf16.msrb.mxu2 %v2543_v59  ;;  %v1994_v59 = vld [vmem:[%s4348_s1 + $0x98] sm:$0xf]  ;;  %v2840_v48 = vld [vmem:[%s4348_s1 + $0x4c0] sm:$0xf0] }
  0x73   :  { %1574 = vmatpush.bf16.msrb.mxu3 %v2639_v63  ;;  %v1995_v63 = vor.u32 %v2708_v60, %v1994_v59  ;;  %v2378_v60 = vld [vmem:[%s4348_s1 + $0x398] sm:$0xf] }
  0x74   :  { %1533 = vmatpush.bf16.msrb.mxu0 %v2339_v6  ;;  %v1983_v6 = vor.u32 %v2705_v3, %v1982_v2  ;;  %v2729_v2 = vld [vmem:[%s4348_s1 + $0x148] sm:$0xf0] }
  0x75   :  { %1547 = vmatpush.bf16.msrb.mxu1 %v2435_v7  ;;  %v2175_v7 = vor.u32 %v2753_v5, %v2174_v4  ;;  %v2079_v3 = vor.u32 %v2729_v2, %v2078_v62  ;;  %v2282_v4 = vld [vmem:[%s4348_s1 + $0x2d8] sm:$0xf]  ;;  %v2780_v5 = vld [vmem:[%s4348_s1 + $0x2e0] sm:$0xf0] }
  0x76   :  { %1561 = vmatpush.bf16.msrb.mxu2 %v2531_v8  ;;  %v1970_v8 = vld [vmem:[%s4348_s1 + $0x68] sm:$0xf]  ;;  %v2234_v2 = vld [vmem:[%s4348_s1 + $0x278] sm:$0xf] }
  0x77   :  { %1575 = vmatpush.bf16.msrb.mxu3 %v2627_v13  ;;  %v1971_v13 = vor.u32 %v2702_v9, %v1970_v8  ;;  %v2283_v8 = vor.u32 %v2780_v5, %v2282_v4 }
  0x78   :  { %1534 = vmatpush.bf16.msrb.mxu0 %v2327_v20  ;;  %v1959_v20 = vor.u32 %v2699_v16, %v1958_v15  ;;  %v2849_v15 = vld [vmem:[%s4348_s1 + $0x508] sm:$0xf0] }
  0x79   :  { %1548 = vmatpush.bf16.msrb.mxu1 %v2423_v21  ;;  %v2151_v21 = vor.u32 %v2747_v19, %v2150_v18 }
  0x7a   :  { %1562 = vmatpush.bf16.msrb.mxu2 %v2519_v22  ;;  %v1946_v22 = vld [vmem:[%s4348_s1 + $0x38] sm:$0xf] }
  0x7b   :  { %1576 = vmatpush.bf16.msrb.mxu3 %v2615_v26  ;;  %v1947_v26 = vor.u32 %v2696_v23, %v1946_v22  ;;  %v2270_v22 = vld [vmem:[%s4348_s1 + $0x2c0] sm:$0xf]  ;;  %v2777_v23 = vld [vmem:[%s4348_s1 + $0x2c8] sm:$0xf0] }
  0x7c   :  { %1535 = vmatpush.bf16.msrb.mxu0 %v2315_v32  ;;  %v2102_v32 = vld [vmem:[%s4348_s1 + $0x170] sm:$0xf]  ;;  %v2271_v24 = vor.u32 %v2777_v23, %v2270_v22 }
  0x7d   :  { %1549 = vmatpush.bf16.msrb.mxu1 %v2411_v34  ;;  %v2103_v34 = vor.u32 %v2735_v33, %v2102_v32  ;;  %v2843_v32 = vld [vmem:[%s4348_s1 + $0x4d8] sm:$0xf0] }
  0x7e   :  { %1563 = vmatpush.bf16.msrb.mxu2 %v2507_v35  ;;  %v1935_v35 = vor.u32 %v2693_v29, %v1934_v28  ;;  %v2534_v29 = vld [vmem:[%s4348_s1 + $0x4d0] sm:$0xf] }
  0x7f   :  { %1577 = vmatpush.bf16.msrb.mxu3 %v2603_v40  ;;  %v2127_v40 = vor.u32 %v2741_v31, %v2126_v30  ;;  %v2054_v30 = vld [vmem:[%s4348_s1 + $0x110] sm:$0xf]  ;;  %v2723_v31 = vld [vmem:[%s4348_s1 + $0x118] sm:$0xf0] }
  0x80   :  { %1536 = vmatpush.bf16.msrb.mxu0 %v2303_v50  ;;  %v2582_v50 = vld [vmem:[%s4348_s1 + $0x530] sm:$0xf]  ;;  %v2055_v33 = vor.u32 %v2723_v31, %v2054_v30 }
  0x81   :  { %1550 = vmatpush.bf16.msrb.mxu1 %v2399_v53  ;;  %v2783_v53 = vld [vmem:[%s4348_s1 + $0x2f8] sm:$0xf0]  ;;  %v2583_v59 = vor.u32 %v2855_v51, %v2582_v50  ;;  %v2246_v50 = vld [vmem:[%s4348_s1 + $0x290] sm:$0xf] }
  0x82   :  { %1564 = vmatpush.bf16.msrb.mxu2 %v2495_v54  ;;  %v1923_v54 = vor.u32 %v2690_v37, %v1922_v36  ;;  %v2771_v51 = vld [vmem:[%s4348_s1 + $0x298] sm:$0xf0] }
  0x83   :  { %1578 = vmatpush.bf16.msrb.mxu3 %v2591_v55  ;;  %1537 = vmatmul.bf16.vlgmr.msrb.gmra.mxu0 %v3446_v39  ;;  %v2295_v55 = vor.u32 %v2783_v53, %v2294_v49  ;;  %v4056_v53 = vld [vmem:[%s4350_s2] sm:$0x7] }
  0x84   :  { %1585 = vmatpush.bf16.msra.mxu0 %v2007_v56  ;;  %1551 = vmatmul.bf16.vlgmr.msrb.gmra.mxu1 %v3459_v44  ;;  %v2391_v56 = vor.u32 %v2807_v41, %v2390_v38  ;;  %v2330_v38 = vld [vmem:[%s4348_s1 + $0x338] sm:$0xf]  ;;  %v2535_v41 = vor.u32 %v2843_v32, %v2534_v29  ;;  %v291_v4 = vperm.slane %v4056_v53, 0  ;;  %v2762_v29 = vld [vmem:[%s4348_s1 + $0x250] sm:$0xf0] }
  0x85   :  { %1565 = vmatmul.bf16.vlgmr.msrb.gmra.mxu2 %v3457_v43  ;;  %1599 = vmatpush.bf16.msra.mxu1 %v2103_v34  ;;  %v2258_v34 = vld [vmem:[%s4348_s1 + $0x2a8] sm:$0xf]  ;;  %v2474_v32 = vld [vmem:[%s4348_s1 + $0x458] sm:$0xf] }
  0x86   :  { %1613 = vmatpush.bf16.msra.mxu2 %v2199_v57  ;;  %1579 = vmatmul.bf16.vlgmr.msrb.gmra.mxu3 %v3467_v47  ;;  %v2115_v57 = vor.u32 %v2738_v45, %v2114_v42  ;;  %v2522_v42 = vld [vmem:[%s4348_s1 + $0x4b8] sm:$0xf] }
  0x87   :  { %1627 = vmatpush.bf16.msra.mxu3 %v2295_v55  ;;  %v2042_v45 = vld [vmem:[%s4348_s1 + $0xf8] sm:$0xf]  ;;  %v2318_v55 = vld [vmem:[%s4348_s1 + $0x320] sm:$0xf] }
  0x88   :  { %1586 = vmatpush.bf16.msra.mxu0 %v1995_v63  ;;  %v2570_v63 = vld [vmem:[%s4348_s1 + $0x518] sm:$0xf]  ;;  %v2043_v49 = vor.u32 %v2720_v46, %v2042_v45 }
  0x89   :  { %1600 = vmatpush.bf16.msra.mxu1 %v2091_v52  ;;  %v2247_v52 = vor.u32 %v2771_v51, %v2246_v50  ;;  %v2876_v50 = vld [vmem:[%s4348_s1 + $0x5e0] sm:$0xf0] }
  0x8a   :  { %1614 = vmatpush.bf16.msra.mxu2 %v2187_v0  ;;  %v2852_v0 = vld [vmem:[%s4348_s1 + $0x520] sm:$0xf0] }
  0x8b   :  { %v2571_v9 = vor.u32 %v2852_v0, %v2570_v63  ;;  %1628 = vmatpush.bf16.msra.mxu3 %v2283_v8  ;;  %v2837_v63 = vld [vmem:[%s4348_s1 + $0x4a8] sm:$0xf0]  ;;  %v2306_v8 = vld [vmem:[%s4348_s1 + $0x308] sm:$0xf] }
  0x8c   :  { %1587 = vmatpush.bf16.msra.mxu0 %v1983_v6  ;;  %v2379_v6 = vor.u32 %v2804_v61, %v2378_v60  ;;  %v2030_v60 = vld [vmem:[%s4348_s1 + $0xe0] sm:$0xf]  ;;  %v2717_v61 = vld [vmem:[%s4348_s1 + $0xe8] sm:$0xf0] }
  0x8d   :  { %1601 = vmatpush.bf16.msra.mxu1 %v2079_v3  ;;  %v2031_v0 = vor.u32 %v2717_v61, %v2030_v60  ;;  %v2768_v3 = vld [vmem:[%s4348_s1 + $0x280] sm:$0xf0]  ;;  %v2654_v60 = vld [vmem:[%s4348_s1 + $0x5c0] sm:$0xf]  ;;  %v2873_v61 = vld [vmem:[%s4348_s1 + $0x5c8] sm:$0xf0] }
  0x8e   :  { %1615 = vmatpush.bf16.msra.mxu2 %v2175_v7  ;;  %v2366_v7 = vld [vmem:[%s4348_s1 + $0x380] sm:$0xf] }
  0x8f   :  { %v2367_v18 = vor.u32 %v2801_v11, %v2366_v7  ;;  %1629 = vmatpush.bf16.msra.mxu3 %v2271_v24 }
  0x90   :  { %1588 = vmatpush.bf16.msra.mxu0 %v1971_v13  ;;  %v2726_v13 = vld [vmem:[%s4348_s1 + $0x130] sm:$0xf0] }
  0x91   :  { %v2067_v16 = vor.u32 %v2726_v13, %v2066_v12  ;;  %v2498_v12 = vld [vmem:[%s4348_s1 + $0x488] sm:$0xf] }
  0x92   :  { %1616 = vmatpush.bf16.msra.mxu2 %v2163_v14  ;;  %v2558_v14 = vld [vmem:[%s4348_s1 + $0x500] sm:$0xf]  ;;  %v2018_v13 = vld [vmem:[%s4348_s1 + $0xc8] sm:$0xf] }
  0x93   :  { %v2559_v19 = vor.u32 %v2849_v15, %v2558_v14  ;;  %1602 = vmatpush.bf16.msra.mxu1 %v2067_v16  ;;  %v2714_v14 = vld [vmem:[%s4348_s1 + $0xd0] sm:$0xf0] }
  0x94   :  { %1589 = vmatpush.bf16.msra.mxu0 %v1959_v20  ;;  %v2354_v20 = vld [vmem:[%s4348_s1 + $0x368] sm:$0xf]  ;;  %v2834_v15 = vld [vmem:[%s4348_s1 + $0x490] sm:$0xf0]  ;;  %v2019_v16 = vor.u32 %v2714_v14, %v2018_v13  ;;  %v1709_v13 = vld [vmem:[%s4351_s3 + $0x40] sm:$0xff] }
  0x95   :  { %v2426_v14 = vld [vmem:[%s4348_s1 + $0x3f8] sm:$0xf] }
  0x96   :  { %1617 = vmatpush.bf16.msra.mxu2 %v2151_v21  ;;  %v2798_v21 = vld [vmem:[%s4348_s1 + $0x370] sm:$0xf0] }
  0x97   :  { %v2355_v25 = vor.u32 %v2798_v21, %v2354_v20  ;;  %1603 = vmatpush.bf16.msra.mxu1 %v2055_v33  ;;  %v2828_v33 = vld [vmem:[%s4348_s1 + $0x460] sm:$0xf0] }
  0x98   :  { %1590 = vmatpush.bf16.msra.mxu0 %v1947_v26  ;;  %v2342_v26 = vld [vmem:[%s4348_s1 + $0x350] sm:$0xf] }
  0x9a   :  { %1618 = vmatpush.bf16.msra.mxu2 %v2139_v27  ;;  %v2795_v27 = vld [vmem:[%s4348_s1 + $0x358] sm:$0xf0] }
  0x9b   :  { %v2343_v37 = vor.u32 %v2795_v27, %v2342_v26  ;;  %1604 = vmatpush.bf16.msra.mxu1 %v2043_v49  ;;  %v1716_v27 = vld [vmem:[%s4351_s3 + $0x78] sm:$0xff] }
  0x9c   :  { %1591 = vmatpush.bf16.msra.mxu0 %v1935_v35  ;;  %v2774_v35 = vld [vmem:[%s4348_s1 + $0x2b0] sm:$0xf0]  ;;  %v2666_v49 = vld [vmem:[%s4348_s1 + $0x5d8] sm:$0xf] }
  0x9d   :  { %v2259_v36 = vor.u32 %v2774_v35, %v2258_v34  ;;  %v2678_v34 = vld [vmem:[%s4348_s1 + $0x5f0] sm:$0xf] }
  0x9e   :  { %1619 = vmatpush.bf16.msra.mxu2 %v2127_v40  ;;  %v2792_v40 = vld [vmem:[%s4348_s1 + $0x340] sm:$0xf0] }
  0x9f   :  { %1630 = vmatpush.bf16.msra.mxu3 %v2259_v36  ;;  %1605 = vmatpush.bf16.msra.mxu1 %v2031_v0  ;;  %v1715_v36 = vld [vmem:[%s4351_s3 + $0x70] sm:$0xff] }
  0xa0   :  { %1592 = vmatpush.bf16.msra.mxu0 %v1923_v54  ;;  %v2331_v54 = vor.u32 %v2792_v40, %v2330_v38  ;;  %v1370_v62 = vpop.f32.mrf.mxu0  ;;  %v2879_v38 = vld [vmem:[%s4348_s1 + $0x5f8] sm:$0xf0]  ;;  %v1711_v0 = vld [vmem:[%s4351_s3 + $0x50] sm:$0xff] }
  0xa1   :  { %v1371_v20 = vadd.f32 %v1370_v62, %v291_v4  ;;  %v2679_v45 = vor.u32 %v2879_v38, %v2678_v34  ;;  %v2810_v38 = vld [vmem:[%s4348_s1 + $0x3d0] sm:$0xf0] }
  0xa2   :  { %1620 = vmatpush.bf16.msra.mxu2 %v2115_v57  ;;  %v2523_v57 = vor.u32 %v2840_v48, %v2522_v42  ;;  %v1714_v42 = vld [vmem:[%s4351_s3 + $0x68] sm:$0xff] }
  0xa3   :  { %1593 = vmatmul.bf16.vlgmr.msra.gmra.mxu0 %v3224_v58  ;;  %v2546_v58 = vld [vmem:[%s4348_s1 + $0x4e8] sm:$0xf]  ;;  %1631 = vmatpush.bf16.msra.mxu3 %v2247_v52  ;;  %v1384_v5 = vpop.f32.mrf.mxu1  ;;  %v1713_v52 = vld [vmem:[%s4351_s3 + $0x60] sm:$0xff] }
  0xa4   :  { %1641 = vmatpush.bf16.msrb.mxu0 %v2391_v56  ;;  %v2789_v56 = vld [vmem:[%s4348_s1 + $0x328] sm:$0xf0]  ;;  %1606 = vmatpush.bf16.msra.mxu1 %v2019_v16  ;;  %v1385_v30 = vadd.f32 %v1384_v5, %v1371_v20 }
  0xa5   :  { %1621 = vmatmul.bf16.vlgmr.msra.gmra.mxu2 %v3238_v1  ;;  %v2846_v1 = vld [vmem:[%s4348_s1 + $0x4f0] sm:$0xf0]  ;;  %v2319_v7 = vor.u32 %v2789_v56, %v2318_v55  ;;  %v1712_v56 = vld [vmem:[%s4351_s3 + $0x58] sm:$0xff]  ;;  %v1710_v5 = vld [vmem:[%s4351_s3 + $0x48] sm:$0xff] }
  0xa6   :  { %1669 = vmatpush.bf16.msrb.mxu2 %v2583_v59  ;;  %v2547_v28 = vor.u32 %v2846_v1, %v2546_v58  ;;  %v2510_v59 = vld [vmem:[%s4348_s1 + $0x4a0] sm:$0xf]  ;;  %v2486_v58 = vld [vmem:[%s4348_s1 + $0x470] sm:$0xf]  ;;  %v2831_v1 = vld [vmem:[%s4348_s1 + $0x478] sm:$0xf0] }
  0xa7   :  { %v2511_v11 = vor.u32 %v2837_v63, %v2510_v59  ;;  %v2487_v23 = vor.u32 %v2831_v1, %v2486_v58  ;;  %1607 = vmatmul.bf16.vlgmr.msra.gmra.mxu1 %v3260_v10  ;;  %v2825_v10 = vld [vmem:[%s4348_s1 + $0x448] sm:$0xf0]  ;;  %v2822_v55 = vld [vmem:[%s4348_s1 + $0x430] sm:$0xf0]  ;;  %v2867_v58 = vld [vmem:[%s4348_s1 + $0x598] sm:$0xf0] }
  0xa8   :  { %1642 = vmatpush.bf16.msrb.mxu0 %v2379_v6  ;;  %v2235_v6 = vor.u32 %v2768_v3, %v2234_v2  ;;  %v1398_v24 = vpop.f32.mrf.mxu2  ;;  %v1372_v35 = vpop.f32.mrf.mxu0  ;;  %v2438_v2 = vld [vmem:[%s4348_s1 + $0x410] sm:$0xf]  ;;  %v2819_v3 = vld [vmem:[%s4348_s1 + $0x418] sm:$0xf0] }
  0xa9   :  { %1655 = vmatpush.bf16.msrb.mxu1 %v2487_v23  ;;  %v1399_v46 = vadd.f32 %v1398_v24, %v1385_v30  ;;  %v1373_v51 = vadd.f32 %v1372_v35, %v291_v4  ;;  %v2414_v23 = vld [vmem:[%s4348_s1 + $0x3e0] sm:$0xf]  ;;  %v2813_v24 = vld [vmem:[%s4348_s1 + $0x3e8] sm:$0xf0] }
  0xaa   :  { %1670 = vmatpush.bf16.msrb.mxu2 %v2571_v9  ;;  %v2786_v9 = vld [vmem:[%s4348_s1 + $0x310] sm:$0xf0]  ;;  %1632 = vmatpush.bf16.msra.mxu3 %v2235_v6  ;;  %v2655_v6 = vor.u32 %v2873_v61, %v2654_v60 }
  0xab   :  { %v2307_v22 = vor.u32 %v2786_v9, %v2306_v8  ;;  %v1412_v26 = vpop.f32.mrf.mxu3  ;;  %v1386_v40 = vpop.f32.mrf.mxu1  ;;  %v2439_v9 = vor.u32 %v2819_v3, %v2438_v2  ;;  %v1731_v60 = vld [vmem:[%s4351_s3 + $0xf0] sm:$0xff]  ;;  %v1728_v2 = vld [vmem:[%s4351_s3 + $0xd8] sm:$0xff] }
  0xac   :  { %1643 = vmatpush.bf16.msrb.mxu0 %v2367_v18  ;;  %v2222_v18 = vld [vmem:[%s4348_s1 + $0x260] sm:$0xf]  ;;  %v1413_v59 = vadd.f32 %v1412_v26, %v1399_v46  ;;  %v1387_v62 = vadd.f32 %v1386_v40, %v1373_v51  ;;  %v2861_v46 = vld [vmem:[%s4348_s1 + $0x568] sm:$0xf0]  ;;  %v1732_v51 = vld [vmem:[%s4351_s3 + $0xf8] sm:$0xff] }
  0xae   :  { %1671 = vmatpush.bf16.msrb.mxu2 %v2559_v19  ;;  %v2765_v19 = vld [vmem:[%s4348_s1 + $0x268] sm:$0xf0] }
  0xaf   :  { %v2223_v21 = vor.u32 %v2765_v19, %v2222_v18  ;;  %v1708_v18 = vld [vmem:[%s4351_s3 + $0x38] sm:$0xff] }
  0xb0   :  { %1644 = vmatpush.bf16.msrb.mxu0 %v2355_v25  ;;  %v2499_v25 = vor.u32 %v2834_v15, %v2498_v12  ;;  %v2816_v15 = vld [vmem:[%s4348_s1 + $0x400] sm:$0xf0] }
  0xb1   :  { %1633 = vmatpush.bf16.msra.mxu3 %v2223_v21  ;;  %v2427_v20 = vor.u32 %v2816_v15, %v2426_v14  ;;  %v2630_v21 = vld [vmem:[%s4348_s1 + $0x590] sm:$0xf]  ;;  %v1718_v14 = vld [vmem:[%s4351_s3 + $0x88] sm:$0xff] }
  0xb2   :  { %1672 = vmatpush.bf16.msrb.mxu2 %v2547_v28  ;;  %v2210_v28 = vld [vmem:[%s4348_s1 + $0x248] sm:$0xf]  ;;  %v2631_v30 = vor.u32 %v2867_v58, %v2630_v21 }
  0xb3   :  { %v2211_v31 = vor.u32 %v2762_v29, %v2210_v28  ;;  %v1414_v63 = vpop.f32.mrf.mxu3  ;;  %v1706_v29 = vld [vmem:[%s4351_s3 + $0x28] sm:$0xff] }
  0xb4   :  { %1645 = vmatpush.bf16.msrb.mxu0 %v2343_v37  ;;  %v2475_v37 = vor.u32 %v2828_v33, %v2474_v32  ;;  %v2618_v32 = vld [vmem:[%s4348_s1 + $0x578] sm:$0xf]  ;;  %v2864_v33 = vld [vmem:[%s4348_s1 + $0x580] sm:$0xf0] }
  0xb5   :  { %1634 = vmatpush.bf16.msra.mxu3 %v2211_v31  ;;  %v2415_v31 = vor.u32 %v2813_v24, %v2414_v23 }
  0xb6   :  { %1673 = vmatpush.bf16.msrb.mxu2 %v2535_v41  ;;  %v2462_v41 = vld [vmem:[%s4348_s1 + $0x440] sm:$0xf]  ;;  %1656 = vmatpush.bf16.msrb.mxu1 %v2475_v37  ;;  %v2402_v37 = vld [vmem:[%s4348_s1 + $0x3c8] sm:$0xf] }
  0xb7   :  { %v2463_v48 = vor.u32 %v2825_v10, %v2462_v41  ;;  %v1704_v41 = vld [vmem:[%s4351_s3 + $0x18] sm:$0xff]  ;;  %v2619_v10 = vor.u32 %v2864_v33, %v2618_v32 }
  0xb8   :  { %1646 = vmatpush.bf16.msrb.mxu0 %v2331_v54  ;;  %v2450_v54 = vld [vmem:[%s4348_s1 + $0x428] sm:$0xf]  ;;  %1635 = vmatmul.bf16.vlgmr.msra.gmra.mxu3 %v3274_v17  ;;  %v2870_v17 = vld [vmem:[%s4348_s1 + $0x5b0] sm:$0xf0] }
  0xb9   :  { %1683 = vmatpush.bf16.msrb.mxu3 %v2679_v45  ;;  %v2606_v45 = vld [vmem:[%s4348_s1 + $0x560] sm:$0xf] }
  0xba   :  { %1674 = vmatpush.bf16.msrb.mxu2 %v2523_v57  ;;  %v2667_v57 = vor.u32 %v2876_v50, %v2666_v49  ;;  %1657 = vmatpush.bf16.msrb.mxu1 %v2463_v48  ;;  %v1703_v49 = vld [vmem:[%s4351_s3 + $0x10] sm:$0xff] }
  0xbc   :  { %1647 = vmatpush.bf16.msrb.mxu0 %v2319_v7 }
  0xbd   :  { %1684 = vmatpush.bf16.msrb.mxu3 %v2667_v57  ;;  %v2594_v57 = vld [vmem:[%s4348_s1 + $0x548] sm:$0xf] }
  0xbe   :  { %1675 = vmatpush.bf16.msrb.mxu2 %v2511_v11  ;;  %v2642_v11 = vld [vmem:[%s4348_s1 + $0x5a8] sm:$0xf] }
  0xbf   :  { %v2643_v19 = vor.u32 %v2870_v17, %v2642_v11  ;;  %v1720_v11 = vld [vmem:[%s4351_s3 + $0x98] sm:$0xff]  ;;  %v292_v17 = vperm.slane %v4056_v53, 1 }
  0xc0   :  { %1648 = vmatpush.bf16.msrb.mxu0 %v2307_v22  ;;  %v1426_v4 = vpop.f32.mrf.mxu0  ;;  %v1707_v22 = vld [vmem:[%s4351_s3 + $0x30] sm:$0xff] }
  0xc1   :  { %v1427_v7 = vadd.f32 %v1426_v4, %v1413_v59  ;;  %v1440_v8 = vpop.f32.mrf.mxu1  ;;  %1685 = vmatpush.bf16.msrb.mxu3 %v2655_v6  ;;  %v2858_v59 = vld [vmem:[%s4348_s1 + $0x550] sm:$0xf0] }
  0xc2   :  { %1676 = vmatpush.bf16.msrb.mxu2 %v2499_v25  ;;  %v1727_v4 = vld [vmem:[%s4351_s3 + $0xd0] sm:$0xff] }
  0xc3   :  { %1649 = vmatmul.bf16.vlgmr.msrb.gmra.mxu0 %v3446_v39  ;;  %v1400_v39 = vpop.f32.mrf.mxu2  ;;  %v1441_v16 = vadd.f32 %v1440_v8, %v1427_v7  ;;  %v1723_v6 = vld [vmem:[%s4351_s3 + $0xb0] sm:$0xff]  ;;  %v1722_v7 = vld [vmem:[%s4351_s3 + $0xa8] sm:$0xff]  ;;  %v1721_v8 = vld [vmem:[%s4351_s3 + $0xa0] sm:$0xff] }
  0xc4   :  { %1737 = vmatpush.msra.mxu0 %v1716_v27  ;;  %v1401_v12 = vadd.f32 %v1400_v39, %v1387_v62  ;;  %v2595_v62 = vor.u32 %v2858_v59, %v2594_v57 }
  0xc5   :  { %1677 = vmatmul.bf16.vlgmr.msrb.gmra.mxu2 %v3457_v43  ;;  %v2451_v43 = vor.u32 %v2822_v55, %v2450_v54  ;;  %1686 = vmatpush.bf16.msrb.mxu3 %v2643_v19  ;;  %v1702_v55 = vld [vmem:[%s4351_s3 + $0x8] sm:$0xff] }
  0xc6   :  { %2880 = vmatpush.msra.mxu2 %v1716_v27  ;;  %1738 = vmatpush.msra.mxu0 %v1715_v36  ;;  %v1415_v1 = vadd.f32 %v1414_v63, %v1401_v12  ;;  %v1730_v63 = vld [vmem:[%s4351_s3 + $0xe8] sm:$0xff]  ;;  %v1719_v12 = vld [vmem:[%s4351_s3 + $0x90] sm:$0xff] }
  0xc7   :  { %1658 = vmatpush.bf16.msrb.mxu1 %v2451_v43  ;;  %v1701_v43 = vld [vmem:[%s4351_s3] sm:$0xff] }
  0xc8   :  { %2881 = vmatpush.msra.mxu2 %v1715_v36  ;;  %1739 = vmatpush.msra.mxu0 %v1714_v42  ;;  %v1428_v27 = vpop.f32.mrf.mxu0  ;;  %v1705_v36 = vld [vmem:[%s4351_s3 + $0x20] sm:$0xff] }
  0xc9   :  { %v1468_v28 = vpop.f32.mrf.mxu3  ;;  %v1429_v34 = vadd.f32 %v1428_v27, %v1415_v1  ;;  %v1442_v40 = vpop.f32.mrf.mxu1  ;;  %1687 = vmatpush.bf16.msrb.mxu3 %v2631_v30 }
  0xca   :  { %2882 = vmatpush.msra.mxu2 %v1714_v42  ;;  %1740 = vmatpush.msra.mxu0 %v1713_v52  ;;  %v2403_v42 = vor.u32 %v2810_v38, %v2402_v37 }
  0xcb   :  { %1659 = vmatpush.bf16.msrb.mxu1 %v2439_v9  ;;  %v1454_v25 = vpop.f32.mrf.mxu2  ;;  %v1443_v48 = vadd.f32 %v1442_v40, %v1429_v34 }
  0xcc   :  { %2883 = vmatpush.msra.mxu2 %v1713_v52  ;;  %1741 = vmatpush.msra.mxu0 %v1712_v56  ;;  %v1455_v26 = vadd.f32 %v1454_v25, %v1441_v16  ;;  %v1717_v16 = vld [vmem:[%s4351_s3 + $0x80] sm:$0xff] }
  0xcd   :  { %1688 = vmatpush.bf16.msrb.mxu3 %v2619_v10 }
  0xce   :  { %2884 = vmatpush.msra.mxu2 %v1712_v56  ;;  %1742 = vmatpush.msra.mxu0 %v1711_v0  ;;  %v1469_v35 = vadd.f32 %v1468_v28, %v1455_v26  ;;  %v2607_v56 = vor.u32 %v2861_v46, %v2606_v45 }
  0xcf   :  { %1660 = vmatpush.bf16.msrb.mxu1 %v2427_v20 }
  0xd0   :  { %2885 = vmatpush.msra.mxu2 %v1711_v0  ;;  %1743 = vmatpush.msra.mxu0 %v1710_v5  ;;  %2913 = vtanh.f32 %v1469_v35  ;;  %v1729_v0 = vld [vmem:[%s4351_s3 + $0xe0] sm:$0xff] }
  0xd1   :  { %v1470_v54 = vpop.f32.mrf.mxu3  ;;  %1689 = vmatpush.bf16.msrb.mxu3 %v2607_v56 }
  0xd2   :  { %2886 = vmatpush.msra.mxu2 %v1710_v5  ;;  %1744 = vmatpush.msra.mxu0 %v1709_v13  ;;  %v1725_v5 = vld [vmem:[%s4351_s3 + $0xc0] sm:$0xff] }
  0xd3   :  { %1661 = vmatpush.bf16.msrb.mxu1 %v2415_v31  ;;  %v1456_v50 = vpop.f32.mrf.mxu2 }
  0xd4   :  { %2887 = vmatpush.msra.mxu2 %v1709_v13  ;;  %1745 = vmatpush.msra.mxu0 %v1708_v18  ;;  %v1457_v52 = vadd.f32 %v1456_v50, %v1443_v48 }
  0xd5   :  { %1690 = vmatpush.bf16.msrb.mxu3 %v2595_v62 }
  0xd6   :  { %2888 = vmatpush.msra.mxu2 %v1708_v18  ;;  %1746 = vmatpush.msra.mxu0 %v1707_v22  ;;  %v1471_v39 = vadd.f32 %v1470_v54, %v1457_v52  ;;  %v2914_v61 = vpop.eup %2913 }
  0xd7   :  { %1662 = vmatpush.bf16.msrb.mxu1 %v2403_v42 }
  0xd8   :  { %2889 = vmatpush.msra.mxu2 %v1707_v22  ;;  %1747 = vmatpush.msra.mxu0 %v1706_v29  ;;  %2915 = vtanh.f32 %v1471_v39 }
  0xd9   :  { %2896 = vmatpush.msra.mxu3 %v1732_v51 }
  0xda   :  { %2890 = vmatpush.msra.mxu2 %v1706_v29  ;;  %1748 = vmatpush.msra.mxu0 %v1705_v36 }
  0xdb   :  { %1760 = vmatpush.msra.mxu1 %v1732_v51  ;;  %1691 = vmatmul.bf16.vlgmr.msrb.gmra.mxu3 %v3467_v47  ;;  %v1724_v47 = vld [vmem:[%s4351_s3 + $0xb8] sm:$0xff]  ;;  %v293_v51 = vperm.slane %v4056_v53, 2 }
  0xdc   :  { %2891 = vmatpush.msra.mxu2 %v1705_v36  ;;  %1749 = vmatpush.msra.mxu0 %v1704_v41 }
  0xdd   :  { %1761 = vmatpush.msra.mxu1 %v1731_v60  ;;  %2897 = vmatpush.msra.mxu3 %v1731_v60 }
  0xde   :  { %2892 = vmatpush.msra.mxu2 %v1704_v41  ;;  %1750 = vmatpush.msra.mxu0 %v1703_v49  ;;  %v2916_v3 = vpop.eup %2915 }
  0xdf   :  { %1762 = vmatpush.msra.mxu1 %v1730_v63  ;;  %2898 = vmatpush.msra.mxu3 %v1730_v63 }
  0xe0   :  { %2893 = vmatpush.msra.mxu2 %v1703_v49  ;;  %1751 = vmatpush.msra.mxu0 %v1702_v55  ;;  %v1482_v9 = vpop.f32.mrf.mxu0 }
  0xe1   :  { %1663 = vmatmul.bf16.vlgmr.msrb.gmra.mxu1 %v3459_v44  ;;  %v1726_v44 = vld [vmem:[%s4351_s3 + $0xc8] sm:$0xff]  ;;  %2899 = vmatpush.msra.mxu3 %v1729_v0  ;;  %v1496_v13 = vpop.f32.mrf.mxu1  ;;  %v1483_v15 = vadd.f32 %v1482_v9, %v292_v17 }
  0xe2   :  { %2894 = vmatpush.msra.mxu2 %v1702_v55  ;;  %1752 = vmatpush.msra.mxu0 %v1701_v43 }
  0xe3   :  { %1753 = vmatmul.f32.vlgmr.msra.gmra.mxu0 %v2914_v61  ;;  %1763 = vmatpush.msra.mxu1 %v1729_v0  ;;  %v1497_v20 = vadd.f32 %v1496_v13, %v1483_v15  ;;  %v2912_v15 = vld [vmem:[%s4352_s4] ss:$0 sm:$0xff] }
  0xe4   :  { %2895 = vmatpush.msra.mxu2 %v1701_v43  ;;  %2900 = vmatpush.msra.mxu3 %v1728_v2 }
  0xe5   :  { %1756 = vmatmul.f32.vlgmr.msra.gmra.mxu2 %v2916_v3  ;;  %1764 = vmatpush.msra.mxu1 %v1728_v2 }
  0xe6   :  { %2901 = vmatpush.msra.mxu3 %v1727_v4 }
  0xe7   :  { %1765 = vmatpush.msra.mxu1 %v1727_v4 }
  0xe8   :  { %2902 = vmatpush.msra.mxu3 %v1726_v44  ;;  %v1510_v18 = vpop.f32.mrf.mxu2  ;;  %v1484_v21 = vpop.f32.mrf.mxu0 }
  0xe9   :  { %1766 = vmatpush.msra.mxu1 %v1726_v44  ;;  %v1524_v19 = vpop.f32.mrf.mxu3  ;;  %v1498_v58 = vpop.f32.mrf.mxu1  ;;  %v1511_v1 = vadd.f32 %v1510_v18, %v1497_v20  ;;  %v1485_v22 = vadd.f32 %v1484_v21, %v292_v17 }
  0xea   :  { %2903 = vmatpush.msra.mxu3 %v1725_v5 }
  0xeb   :  { %1767 = vmatpush.msra.mxu1 %v1725_v5  ;;  %v1525_v24 = vadd.f32 %v1524_v19, %v1511_v1  ;;  %v1499_v25 = vadd.f32 %v1498_v58, %v1485_v22 }
  0xec   :  { %2904 = vmatpush.msra.mxu3 %v1724_v47 }
  0xed   :  { %1768 = vmatpush.msra.mxu1 %v1724_v47 }
  0xee   :  { %2905 = vmatpush.msra.mxu3 %v1723_v6 }
  0xef   :  { %1769 = vmatpush.msra.mxu1 %v1723_v6 }
  0xf0   :  { %2906 = vmatpush.msra.mxu3 %v1722_v7  ;;  %v1512_v23 = vpop.f32.mrf.mxu2 }
  0xf1   :  { %1770 = vmatpush.msra.mxu1 %v1722_v7  ;;  %v1526_v26 = vpop.f32.mrf.mxu3  ;;  %v1513_v30 = vadd.f32 %v1512_v23, %v1499_v25 }
  0xf2   :  { %2907 = vmatpush.msra.mxu3 %v1721_v8 }
  0xf3   :  { %1771 = vmatpush.msra.mxu1 %v1721_v8  ;;  %v1527_v33 = vadd.f32 %v1526_v26, %v1513_v30 }
  0xf4   :  { %2908 = vmatpush.msra.mxu3 %v1720_v11 }
  0xf5   :  { %1772 = vmatpush.msra.mxu1 %v1720_v11 }
  0xf6   :  { %2909 = vmatpush.msra.mxu3 %v1719_v12 }
  0xf7   :  { %1773 = vmatpush.msra.mxu1 %v1719_v12 }
  0xf8   :  { %2910 = vmatpush.msra.mxu3 %v1718_v14 }
  0xf9   :  { %1774 = vmatpush.msra.mxu1 %v1718_v14 }
  0xfa   :  { %2911 = vmatpush.msra.mxu3 %v1717_v16 }
  0xfb   :  { %1775 = vmatpush.msra.mxu1 %v1717_v16 }
 0x100   :  { %v1538_v27 = vpop.f32.mrf.mxu0 }
 0x101   :  { %v1539_v28 = vadd.f32 %v1538_v27, %v1525_v24  ;;  %v1552_v29 = vpop.f32.mrf.mxu1 }
 0x103   :  { %v1553_v31 = vadd.f32 %v1552_v29, %v1539_v28 }
 0x108   :  { %v1566_v32 = vpop.f32.mrf.mxu2  ;;  %v1540_v36 = vpop.f32.mrf.mxu0 }
 0x109   :  { %v1567_v34 = vadd.f32 %v1566_v32, %v1553_v31  ;;  %v1580_v35 = vpop.f32.mrf.mxu3  ;;  %v1541_v38 = vadd.f32 %v1540_v36, %v1527_v33  ;;  %v1554_v40 = vpop.f32.mrf.mxu1 }
 0x10b   :  { %v1581_v37 = vadd.f32 %v1580_v35, %v1567_v34  ;;  %v1555_v41 = vadd.f32 %v1554_v40, %v1541_v38 }
 0x10d   :  { %2917 = vtanh.f32 %v1581_v37 }
 0x110   :  { %v1568_v10 = vpop.f32.mrf.mxu2 }
 0x111   :  { %v1569_v42 = vadd.f32 %v1568_v10, %v1555_v41  ;;  %v1582_v45 = vpop.f32.mrf.mxu3 }
 0x113   :  { %v2918_v46 = vpop.eup %2917  ;;  %v1583_v48 = vadd.f32 %v1582_v45, %v1569_v42 }
 0x114   :  { %1776 = vmatmul.f32.vlgmr.msra.gmra.mxu1 %v2918_v46 }
 0x115   :  { %2919 = vtanh.f32 %v1583_v48 }
 0x11b   :  { %v2920_v49 = vpop.eup %2919 }
 0x11c   :  { %1779 = vmatmul.f32.vlgmr.msra.gmra.mxu3 %v2920_v49 }
 0x120   :  { %v1594_v50 = vpop.f32.mrf.mxu0 }
 0x121   :  { %v1595_v54 = vadd.f32 %v1594_v50, %v293_v51 }
 0x124   :  { %v1608_v56 = vpop.f32.mrf.mxu1 }
 0x125   :  { %v1609_v57 = vadd.f32 %v1608_v56, %v1595_v54 }
 0x128   :  { %v1596_v52 = vpop.f32.mrf.mxu0  ;;  %v1622_v55 = vpop.f32.mrf.mxu2 }
 0x129   :  { %v1623_v39 = vadd.f32 %v1622_v55, %v1609_v57  ;;  %v1597_v60 = vadd.f32 %v1596_v52, %v293_v51 }
 0x12c   :  { %v1610_v63 = vpop.f32.mrf.mxu1 }
 0x12d   :  { %v1611_v0 = vadd.f32 %v1610_v63, %v1597_v60 }
 0x130   :  { %v1624_v2 = vpop.f32.mrf.mxu2 }
 0x131   :  { %v1625_v3 = vadd.f32 %v1624_v2, %v1611_v0 }
 0x13b   :  { %v1636_v59 = vpop.f32.mrf.mxu3 }
 0x13c   :  { %v1637_v61 = vadd.f32 %v1636_v59, %v1623_v39 }
 0x140   :  { %v1650_v43 = vpop.f32.mrf.mxu0 }
 0x141   :  { %v1651_v62 = vadd.f32 %v1650_v43, %v1637_v61 }
 0x143   :  { %v1638_v4 = vpop.f32.mrf.mxu3 }
 0x144   :  { %v1639_v44 = vadd.f32 %v1638_v4, %v1625_v3 }
 0x148   :  { %v1652_v5 = vpop.f32.mrf.mxu0  ;;  %v4313_v53 = vpop.f32.mrf.mxu2 }
 0x149   :  { %v1653_v47 = vadd.f32 %v1652_v5, %v1639_v44 }
 0x150   :  { %v1680_v17 = vpop.f32.mrf.mxu2 }
 0x15e   :  { %v1664_v6 = vpop.f32.mrf.mxu1  ;;  %v4315_v9 = vpop.f32.mrf.mxu3 }
 0x15f   :  { %v1665_v7 = vadd.f32 %v1664_v6, %v1651_v62 }
 0x160   :  { %v1754_v16 = vpop.f32.mrf.mxu0 }
 0x161   :  { %v1755_v18 = vadd.f32 %v2912_v15, %v1754_v16  ;;  %v1679_v3 = vadd.f32 %v4313_v53, %v1665_v7 }
 0x163   :  { %v1693_v6 = vadd.f32 %v4315_v9, %v1679_v3 }
 0x166   :  { %v1666_v8 = vpop.f32.mrf.mxu1  ;;  %v1694_v13 = vpop.f32.mrf.mxu3 }
 0x167   :  { %v1667_v11 = vadd.f32 %v1666_v8, %v1653_v47 }
 0x168   :  { %v1757_v23 = vpop.f32.mrf.mxu2 }
 0x169   :  { %v1681_v12 = vadd.f32 %v1680_v17, %v1667_v11  ;;  %v1758_v26 = vadd.f32 %v2912_v15, %v1757_v23 }
 0x16b   :  { %v4317_v14 = vadd.f32 %v1694_v13, %v1681_v12 }
 0x191   :  { %v1777_v19 = vpop.f32.mrf.mxu1 }
 0x192   :  { %v1778_v20 = vadd.f32 %v1777_v19, %v1755_v18 }
 0x194   :  { %v1784_v21 = vsel %vm1783_vm0, %v1778_v20, -inf }
 0x195   :  { %v1785_v58 = vrot.slane %v1784_v21, 4 }
 0x197   :  { %v1786_v1 = vmax.f32 %v1784_v21, %v1785_v58 }
 0x199   :  { %v1787_v22 = vrot.slane %v1786_v1, 2 }
 0x19b   :  { %v1788_v24 = vmax.f32 %v1786_v1, %v1787_v22 }
 0x19d   :  { %v1789_v25 = vrot.slane %v1788_v24, 1 }
 0x19f   :  { %v1790_v27 = vmax.f32 %v1788_v24, %v1789_v25  ;;  %v1780_v28 = vpop.f32.mrf.mxu3  ;;  %v1864_v24 = vld [vmem:[%s4354_s5] sm:$0x1] }
 0x1a0   :  { %v1781_v29 = vadd.f32 %v1780_v28, %v1758_v26 }
 0x1a1   :  { %v1798_v30 = vsub.f32 %v1778_v20, %v1790_v27 }
 0x1a2   :  { %v1791_v31 = vsel %vm1783_vm0, %v1781_v29, -inf }
 0x1a3   :  { %v1800_v32 = vmul.f32 1.442695, %v1798_v30  ;;  %v1792_v33 = vrot.slane %v1791_v31, 4 }
 0x1a5   :  { %2921 = vpow2.f32 %v1800_v32  ;;  %v1793_v34 = vmax.f32 %v1791_v31, %v1792_v33 }
 0x1a7   :  { %v1794_v35 = vrot.slane %v1793_v34, 2 }
 0x1a9   :  { %v1795_v36 = vmax.f32 %v1793_v34, %v1794_v35 }
 0x1ab   :  { %v2922_v37 = vpop.eup %2921  ;;  %v1796_v38 = vrot.slane %v1795_v36, 1 }
 0x1ac   :  { %v1804_v40 = vsel %vm1783_vm0, %v2922_v37, 0.0 }
 0x1ad   :  { %v1805_v41 = vrot.slane %v1804_v40, 4  ;;  %v1797_v10 = vmax.f32 %v1795_v36, %v1796_v38 }
 0x1af   :  { %v1806_v42 = vadd.f32 %v1805_v41, %v1804_v40  ;;  %v1799_v45 = vsub.f32 %v1781_v29, %v1797_v10 }
 0x1b1   :  { %v1807_v46 = vrot.slane %v1806_v42, 2  ;;  %v1802_v48 = vmul.f32 1.442695, %v1799_v45 }
 0x1b3   :  { %v1808_v49 = vadd.f32 %v1807_v46, %v1806_v42  ;;  %2923 = vpow2.f32 %v1802_v48 }
 0x1b5   :  { %v1809_v50 = vrot.slane %v1808_v49, 1 }
 0x1b7   :  { %v1810_v51 = vadd.f32 %v1809_v50, %v1808_v49 }
 0x1b9   :  { %v2924_v52 = vpop.eup %2923  ;;  %2925 = vrcp.f32 %v1810_v51  ;;  %v1829_v61 = vand.u32 2147483648, %v1810_v51  ;;  %v1827_v0 = vand.u32 2147483647, %v1810_v51  ;;  %vm1823_vm2 = vweird.f32 %v1810_v51 }
 0x1ba   :  { %v1811_v54 = vsel %vm1783_vm0, %v2924_v52, 0.0 }
 0x1bb   :  { %v1812_v55 = vrot.slane %v1811_v54, 4  ;;  %v1830_v44 = vor.u32 1.1754944e-38, %v1829_v61  ;;  %vm1828_vm4 = vcmp.eq.f32.partialorder %v1827_v0, 8.507059e+37 }
 0x1bd   :  { %v1813_v56 = vadd.f32 %v1812_v55, %v1811_v54 }
 0x1bf   :  { %v2926_v57 = vpop.eup %2925  ;;  %v1814_v59 = vrot.slane %v1813_v56, 2 }
 0x1c0   :  { %v1819_v39 = vmul.f32 %v2926_v57, %v1810_v51  ;;  %vm1824_vm1 = vweird.f32 %v2926_v57 }
 0x1c1   :  { %v1815_v43 = vadd.f32 %v1814_v59, %v1813_v56  ;;  %vm1825_vm3 = vmor %vm1823_vm2, %vm1824_vm1 }
 0x1c2   :  { %v1820_v60 = vsub.f32 1.0, %v1819_v39 }
 0x1c3   :  { %v1816_v62 = vrot.slane %v1815_v43, 1 }
 0x1c4   :  { %v1821_v63 = vmul.f32 %v2926_v57, %v1820_v60 }
 0x1c5   :  { %v1817_v2 = vadd.f32 %v1816_v62, %v1815_v43 }
 0x1c6   :  { %v1822_v4 = vadd.f32 %v2926_v57, %v1821_v63 }
 0x1c7   :  { %2927 = vrcp.f32 %v1817_v2  ;;  %v1844_v16 = vand.u32 2147483648, %v1817_v2  ;;  %v1842_v19 = vand.u32 2147483647, %v1817_v2  ;;  %vm1838_vm6 = vweird.f32 %v1817_v2 }
 0x1c8   :  { %v1826_v5 = vsel %vm1825_vm3, %v2926_v57, %v1822_v4 }
 0x1c9   :  { %v1831_v47 = vsel %vm1828_vm4, %v1830_v44, %v1826_v5  ;;  %v1845_v58 = vor.u32 1.1754944e-38, %v1844_v16  ;;  %vm1843_vm8 = vcmp.eq.f32.partialorder %v1842_v19, 8.507059e+37 }
 0x1ca   :  { %v1832_v8 = vmul.f32 %v2922_v37, %v1831_v47 }
 0x1cc   :  { %v1848_v11 = vmul.f32 %v1832_v8, %v1693_v6  ;;  %1870 = vst.msk [vmem:[%s4353_s7] sm:$0xff] %vm1783_vm0, %v1832_v8 }
 0x1cd   :  { %v2928_v17 = vpop.eup %2927 }
 0x1ce   :  { %v1850_v53 = vsel %vm1783_vm0, %v1848_v11, 0.0  ;;  %v1834_v7 = vmul.f32 %v2928_v17, %v1817_v2  ;;  %vm1839_vm5 = vweird.f32 %v2928_v17 }
 0x1cf   :  { %v1851_v12 = vrot.slane %v1850_v53, 4  ;;  %vm1840_vm7 = vmor %vm1838_vm6, %vm1839_vm5 }
 0x1d0   :  { %v1835_v13 = vsub.f32 1.0, %v1834_v7 }
 0x1d1   :  { %v1852_v15 = vadd.f32 %v1851_v12, %v1850_v53 }
 0x1d2   :  { %v1836_v18 = vmul.f32 %v2928_v17, %v1835_v13 }
 0x1d3   :  { %v1853_v20 = vrot.slane %v1852_v15, 2 }
 0x1d4   :  { %v1837_v9 = vadd.f32 %v2928_v17, %v1836_v18 }
 0x1d5   :  { %v1854_v21 = vadd.f32 %v1853_v20, %v1852_v15 }
 0x1d6   :  { %v1841_v1 = vsel %vm1840_vm7, %v2928_v17, %v1837_v9 }
 0x1d7   :  { %v1855_v22 = vrot.slane %v1854_v21, 1  ;;  %v1846_v23 = vsel %vm1843_vm8, %v1845_v58, %v1841_v1 }
 0x1d8   :  { %v1847_v25 = vmul.f32 %v2924_v52, %v1846_v23 }
 0x1d9   :  { %v1856_v26 = vadd.f32 %v1855_v22, %v1854_v21 }
 0x1da   :  { %v1849_v27 = vmul.f32 %v1847_v25, %v4317_v14  ;;  %1871 = vst.msk [vmem:[%s4353_s7 + $0x8] sm:$0xff] %vm1783_vm0, %v1847_v25 }
 0x1db   :  { %v1865_v28 = vadd.f32 %v1864_v24, %v1856_v26 }
 0x1dc   :  { %v1857_v29 = vsel %vm1783_vm0, %v1849_v27, 0.0 }
 0x1dd   :  { %1868 = vst.msk [vmem:[%s4355_s6] sm:$0x1] %vm1867_vm9, %v1865_v28  ;;  %v1858_v30 = vrot.slane %v1857_v29, 4 }
 0x1df   :  { %v1859_v31 = vadd.f32 %v1858_v30, %v1857_v29 }
 0x1e1   :  { %v1860_v32 = vrot.slane %v1859_v31, 2 }
 0x1e3   :  { %v1861_v33 = vadd.f32 %v1860_v32, %v1859_v31 }
 0x1e5   :  { %v1862_v34 = vrot.slane %v1861_v33, 1 }
 0x1e7   :  { %v1863_v35 = vadd.f32 %v1862_v34, %v1861_v33 }
 0x1e9   :  { %v1866_v36 = vadd.f32 %v1864_v24, %v1863_v35 }
 0x1eb   :  { %1869 = vst.msk [vmem:[%s4355_s6 + $0x1] sm:$0x1] %vm1867_vm9, %v1866_v36 }

</bundles_post_ra>
